<compile_context>
chip_gen: v7x
topology: tpu7x:2x2x1
jax: 0.10.0
libtpu: 0.0.40
codegen_flags: <defaults>
</compile_context>

<pallas_src>
import functools

import jax
import jax.numpy as jnp
import numpy as np
from jax.experimental import pallas as pl
from jax.experimental.pallas import tpu as pltpu

BN_EPS = 1e-5
LANE = 128
MAX_TILE_M = 512                       # f32/bf16-friendly tile; safe on v5e/v6e/v7x VMEM budgets
VMEM_LIMIT = 48 * 1024 * 1024          # < 64 MiB physical VMEM on v7x, plenty of double-buffer room


def _round_up(x, m):
    return (x + m - 1) // m * m


# --------------------------------------------------------------------------------------
# Kernels
# --------------------------------------------------------------------------------------
def _matmul_stats_kernel(a_ref, w_ref, o_ref, st_ref):
    # conv as im2col matmul (bf16 inputs, f32 accumulation) + per-tile partial BN stats.
    acc = jnp.dot(a_ref[...], w_ref[...], preferred_element_type=jnp.float32)
    o_ref[...] = acc
    s = jnp.sum(acc, axis=0, keepdims=True)
    ss = jnp.sum(acc * acc, axis=0, keepdims=True)
    st_ref[...] = jnp.concatenate([s, ss], axis=0)[None, :, :]


def _matmul_stats_fused_sc_kernel(a_ref, w_ref, as_ref, ws_ref,
                                  o_ref, os_ref, st_ref, sts_ref):
    # conv1 matmul + partial stats, fused with the 1x1-conv shortcut matmul + its partial stats
    # (same M tile -> the extra MXU work hides under the existing DMA pipeline).
    acc = jnp.dot(a_ref[...], w_ref[...], preferred_element_type=jnp.float32)
    o_ref[...] = acc
    st_ref[...] = jnp.concatenate(
        [jnp.sum(acc, axis=0, keepdims=True),
         jnp.sum(acc * acc, axis=0, keepdims=True)], axis=0)[None, :, :]

    acc_s = jnp.dot(as_ref[...], ws_ref[...], preferred_element_type=jnp.float32)
    os_ref[...] = acc_s
    sts_ref[...] = jnp.concatenate(
        [jnp.sum(acc_s, axis=0, keepdims=True),
         jnp.sum(acc_s * acc_s, axis=0, keepdims=True)], axis=0)[None, :, :]


def _bn_scale_shift(st, gamma, beta, inv_m):
    # PyTorch training-mode BN forward: biased variance, eps=1e-5.
    mean = st[0:1, :] * inv_m
    var = st[1:2, :] * inv_m - mean * mean
    scale = jax.lax.rsqrt(var + BN_EPS) * gamma
    shift = beta - mean * scale
    return scale, shift


def _bn_act_kernel(x_ref, st_ref, g_ref, b_ref, o_ref, *, inv_m, relu):
    # BN apply (+optional ReLU): lean one-FMA epilogue, single store per tile.
    scale, shift = _bn_scale_shift(st_ref[...], g_ref[...], b_ref[...], inv_m)
    out = x_ref[...] * scale + shift
    if relu:
        out = jnp.maximum(out, 0.0)
    o_ref[...] = out.astype(o_ref.dtype)


def _bn_add_relu_kernel(x2_ref, st2_ref, g2_ref, b2_ref, res_ref, o_ref, *, inv_m):
    # BN2 apply + identity-residual add + final ReLU.
    s2, h2 = _bn_scale_shift(st2_ref[...], g2_ref[...], b2_ref[...], inv_m)
    out = x2_ref[...] * s2 + h2 + res_ref[...].astype(jnp.float32)
    o_ref[...] = jnp.maximum(out, 0.0).astype(o_ref.dtype)


def _bn_bn_add_relu_kernel(x2_ref, st2_ref, g2_ref, b2_ref,
                           xs_ref, sts_ref, gs_ref, bs_ref, o_ref, *, inv_m):
    # BN2 apply + shortcut-BN apply + add + final ReLU.
    s2, h2 = _bn_scale_shift(st2_ref[...], g2_ref[...], b2_ref[...], inv_m)
    ssc, hsc = _bn_scale_shift(sts_ref[...], gs_ref[...], bs_ref[...], inv_m)
    out = x2_ref[...] * s2 + h2 + xs_ref[...] * ssc + hsc
    o_ref[...] = jnp.maximum(out, 0.0).astype(o_ref.dtype)


# --------------------------------------------------------------------------------------
# pallas_call wrappers
# --------------------------------------------------------------------------------------
def _compiler_params():
    return pltpu.CompilerParams(
        dimension_semantics=("parallel",),
        vmem_limit_bytes=VMEM_LIMIT,
    )


def _row_spec(tile_m, width):
    return pl.BlockSpec((tile_m, width), lambda i: (i, 0))


def _const_spec(shape):
    nd = len(shape)
    return pl.BlockSpec(shape, lambda i: (0,) * nd)


def _stats_spec(c):
    return pl.BlockSpec((1, 2, c), lambda i: (i, 0, 0))


def _matmul_stats(patches, wmat, *, tile_m):
    m_pad, k = patches.shape
    c = wmat.shape[1]
    t = m_pad // tile_m
    return pl.pallas_call(
        _matmul_stats_kernel,
        grid=(t,),
        in_specs=[_row_spec(tile_m, k), _const_spec((k, c))],
        out_specs=(_row_spec(tile_m, c), _stats_spec(c)),
        out_shape=(jax.ShapeDtypeStruct((m_pad, c), jnp.float32),
                   jax.ShapeDtypeStruct((t, 2, c), jnp.float32)),
        compiler_params=_compiler_params(),
    )(patches, wmat)


def _matmul_stats_fused_sc(patches, wmat, patches_s, wmat_s, *, tile_m):
    m_pad, k = patches.shape
    ks = patches_s.shape[1]
    c = wmat.shape[1]
    t = m_pad // tile_m
    return pl.pallas_call(
        _matmul_stats_fused_sc_kernel,
        grid=(t,),
        in_specs=[_row_spec(tile_m, k), _const_spec((k, c)),
                  _row_spec(tile_m, ks), _const_spec((ks, c))],
        out_specs=(_row_spec(tile_m, c), _row_spec(tile_m, c),
                   _stats_spec(c), _stats_spec(c)),
        out_shape=(jax.ShapeDtypeStruct((m_pad, c), jnp.float32),
                   jax.ShapeDtypeStruct((m_pad, c), jnp.float32),
                   jax.ShapeDtypeStruct((t, 2, c), jnp.float32),
                   jax.ShapeDtypeStruct((t, 2, c), jnp.float32)),
        compiler_params=_compiler_params(),
    )(patches, wmat, patches_s, wmat_s)


def _bn_act(x, stats, gamma, beta, *, m_total, relu, out_dtype, tile_m):
    m_pad, c = x.shape
    t = m_pad // tile_m
    return pl.pallas_call(
        functools.partial(_bn_act_kernel, inv_m=1.0 / float(m_total), relu=relu),
        grid=(t,),
        in_specs=[_row_spec(tile_m, c), _const_spec((2, c)),
                  _const_spec((1, c)), _const_spec((1, c))],
        out_specs=_row_spec(tile_m, c),
        out_shape=jax.ShapeDtypeStruct((m_pad, c), out_dtype),
        compiler_params=_compiler_params(),
    )(x, stats, gamma, beta)


def _bn_add_relu(x2, stats2, g2, b2, res, *, m_total, tile_m):
    m_pad, c = x2.shape
    t = m_pad // tile_m
    return pl.pallas_call(
        functools.partial(_bn_add_relu_kernel, inv_m=1.0 / float(m_total)),
        grid=(t,),
        in_specs=[_row_spec(tile_m, c), _const_spec((2, c)),
                  _const_spec((1, c)), _const_spec((1, c)),
                  _row_spec(tile_m, c)],
        out_specs=_row_spec(tile_m, c),
        out_shape=jax.ShapeDtypeStruct((m_pad, c), jnp.float32),
        compiler_params=_compiler_params(),
    )(x2, stats2, g2, b2, res)


def _bn_bn_add_relu(x2, stats2, g2, b2, xs, stats_s, gs, bs, *, m_total, tile_m):
    m_pad, c = x2.shape
    t = m_pad // tile_m
    return pl.pallas_call(
        functools.partial(_bn_bn_add_relu_kernel, inv_m=1.0 / float(m_total)),
        grid=(t,),
        in_specs=[_row_spec(tile_m, c), _const_spec((2, c)),
                  _const_spec((1, c)), _const_spec((1, c)),
                  _row_spec(tile_m, c), _const_spec((2, c)),
                  _const_spec((1, c)), _const_spec((1, c))],
        out_specs=_row_spec(tile_m, c),
        out_shape=jax.ShapeDtypeStruct((m_pad, c), jnp.float32),
        compiler_params=_compiler_params(),
    )(x2, stats2, g2, b2, xs, stats_s, gs, bs)


# --------------------------------------------------------------------------------------
# Glue: im2col / weight & parameter packing (reshape/slice only; compute stays in Pallas)
# --------------------------------------------------------------------------------------
def _im2col(x_nhwc, kh, kw, stride, padding):
    # TODO(synk): im2col is still materialized by XLA in HBM; next step is implicit in-kernel
    # patch construction from a halo-windowed NHWC BlockSpec to cut activation HBM traffic ~9x.
    n, h, w, c = x_nhwc.shape
    xp = jnp.pad(x_nhwc, ((0, 0), (padding, padding), (padding, padding), (0, 0)))
    ho = (h + 2 * padding - kh) // stride + 1
    wo = (w + 2 * padding - kw) // stride + 1
    patches = []
    for i in range(kh):
        for j in range(kw):
            patches.append(
                xp[:, i: i + stride * ho: stride, j: j + stride * wo: stride, :]
            )
    cols = jnp.stack(patches, axis=3)  # [N, Ho, Wo, kh*kw, C]
    return cols.reshape(n * ho * wo, kh * kw * c), ho, wo


def _weight_to_matrix(w_oihw):
    # PyTorch conv weight [Cout, Cin, kh, kw] -> [kh*kw*Cin, Cout] (matches im2col patch order).
    cout, cin, kh, kw = w_oihw.shape
    return jnp.transpose(w_oihw, (2, 3, 1, 0)).reshape(kh * kw * cin, cout)


def _pad_rows(a, m_pad):
    return jnp.pad(a, ((0, m_pad - a.shape[0]), (0, 0)))


def _pad_cols(a, c_pad):
    return jnp.pad(a, ((0, 0), (0, c_pad - a.shape[1])))


def _pad_vec(v, c_pad):
    return jnp.pad(v.astype(jnp.float32), (0, c_pad - v.shape[0])).reshape(1, c_pad)


def init_params(key, in_channels, out_channels, stride):
    ks = jax.random.split(key, 8)
    params = {
        "conv1_w": 0.1 * jax.random.normal(ks[0], (out_channels, in_channels, 3, 3), jnp.float32),
        "bn1_gamma": 1.0 + 0.1 * jax.random.normal(ks[1], (out_channels,), jnp.float32),
        "bn1_beta": 0.1 * jax.random.normal(ks[2], (out_channels,), jnp.float32),
        "conv2_w": 0.1 * jax.random.normal(ks[3], (out_channels, out_channels, 3, 3), jnp.float32),
        "bn2_gamma": 1.0 + 0.1 * jax.random.normal(ks[4], (out_channels,), jnp.float32),
        "bn2_beta": 0.1 * jax.random.normal(ks[5], (out_channels,), jnp.float32),
    }
    if stride != 1 or in_channels != out_channels:
        params["convs_w"] = 0.1 * jax.random.normal(
            ks[6], (out_channels, in_channels, 1, 1), jnp.float32
        )
        params["bns_gamma"] = 1.0 + 0.1 * jax.random.normal(ks[7], (out_channels,), jnp.float32)
        params["bns_beta"] = jnp.zeros((out_channels,), jnp.float32)
    return params


# --------------------------------------------------------------------------------------
# Forward
# --------------------------------------------------------------------------------------
def residual_block_forward(x_nchw, params, stride):
    n, cin, h, w = x_nchw.shape
    cout = params["conv1_w"].shape[0]
    c_pad = _round_up(cout, LANE)  # lane-dense (>=128) output channels

    x_nhwc = jnp.transpose(x_nchw, (0, 2, 3, 1)).astype(jnp.float32)

    # conv1 patches (3x3, stride, pad=1)
    p1, ho, wo = _im2col(x_nhwc, 3, 3, stride, 1)
    m = n * ho * wo
    tile_m = min(MAX_TILE_M, _round_up(m, 16))
    m_pad = _round_up(m, tile_m)

    p1b = _pad_rows(p1, m_pad).astype(jnp.bfloat16)
    w1 = _pad_cols(_weight_to_matrix(params["conv1_w"]), c_pad).astype(jnp.bfloat16)
    g1 = _pad_vec(params["bn1_gamma"], c_pad)
    b1 = _pad_vec(params["bn1_beta"], c_pad)

    has_sc_conv = "convs_w" in params
    if has_sc_conv:
        # Pass 1 (fused): conv1 matmul + stats  AND  1x1 shortcut matmul + stats, same M tiles.
        ps, _, _ = _im2col(x_nhwc, 1, 1, stride, 0)
        psb = _pad_rows(ps, m_pad).astype(jnp.bfloat16)
        ws = _pad_cols(_weight_to_matrix(params["convs_w"]), c_pad).astype(jnp.bfloat16)
        gs = _pad_vec(params["bns_gamma"], c_pad)
        bs = _pad_vec(params["bns_beta"], c_pad)
        conv1_out, sc_out, st1_p, sts_p = _matmul_stats_fused_sc(
            p1b, w1, psb, ws, tile_m=tile_m)
        stats_s = jnp.sum(sts_p, axis=0)  # tiny [2, C] cross-tile reduction (XLA glue)
    else:
        assert stride == 1 and cin == cout, "identity shortcut requires stride==1 and cin==cout"
        conv1_out, st1_p = _matmul_stats(p1b, w1, tile_m=tile_m)
    stats1 = jnp.sum(st1_p, axis=0)

    # Pass 2: BN1 + ReLU (bf16 output feeds the next bf16 matmul)
    y1 = _bn_act(conv1_out, stats1, g1, b1, m_total=m, relu=True,
                 out_dtype=jnp.bfloat16, tile_m=tile_m)
    y1_nhwc = y1[:m, :cout].reshape(n, ho, wo, cout)

    # Pass 3: conv2 matmul + stats
    p2, _, _ = _im2col(y1_nhwc, 3, 3, 1, 1)
    p2b = _pad_rows(p2, m_pad)  # already bf16
    w2 = _pad_cols(_weight_to_matrix(params["conv2_w"]), c_pad).astype(jnp.bfloat16)
    g2 = _pad_vec(params["bn2_gamma"], c_pad)
    b2 = _pad_vec(params["bn2_beta"], c_pad)
    conv2_out, st2_p = _matmul_stats(p2b, w2, tile_m=tile_m)
    stats2 = jnp.sum(st2_p, axis=0)

    # Pass 4: BN2 (+ shortcut BN) + residual add + final ReLU
    if has_sc_conv:
        out = _bn_bn_add_relu(conv2_out, stats2, g2, b2,
                              sc_out, stats_s, gs, bs, m_total=m, tile_m=tile_m)
    else:
        res = _pad_cols(_pad_rows(x_nhwc.reshape(m, cin), m_pad), c_pad)
        out = _bn_add_relu(conv2_out, stats2, g2, b2, res, m_total=m, tile_m=tile_m)

    out_nhwc = out[:m, :cout].reshape(n, ho, wo, cout)
    return jnp.transpose(out_nhwc, (0, 3, 1, 2))


# --------------------------------------------------------------------------------------
# pure-JAX f32 reference (for correctness check only)
# --------------------------------------------------------------------------------------
def _ref_conv(x_nhwc, w_oihw, stride, padding):
    w_hwio = jnp.transpose(w_oihw, (2, 3, 1, 0))
    return jax.lax.conv_general_dilated(
        x_nhwc, w_hwio, (stride, stride),
        ((padding, padding), (padding, padding)),
        dimension_numbers=("NHWC", "HWIO", "NHWC"),
    )


def _ref_bn(x_nhwc, gamma, beta):
    mean = jnp.mean(x_nhwc, axis=(0, 1, 2), keepdims=True)
    var = jnp.mean(jnp.square(x_nhwc - mean), axis=(0, 1, 2), keepdims=True)
    return (x_nhwc - mean) * jax.lax.rsqrt(var + BN_EPS) * gamma + beta


def residual_block_reference(x_nchw, params, stride):
    x = jnp.transpose(x_nchw, (0, 2, 3, 1)).astype(jnp.float32)
    y = _ref_bn(_ref_conv(x, params["conv1_w"], stride, 1),
                params["bn1_gamma"], params["bn1_beta"])
    y = jnp.maximum(y, 0.0)
    y = _ref_bn(_ref_conv(y, params["conv2_w"], 1, 1),
                params["bn2_gamma"], params["bn2_beta"])
    if "convs_w" in params:
        s = _ref_bn(_ref_conv(x, params["convs_w"], stride, 0),
                    params["bns_gamma"], params["bns_beta"])
    else:
        s = x
    out = jnp.maximum(y + s, 0.0)
    return jnp.transpose(out, (0, 3, 1, 2))


if __name__ == "__main__":
    key = jax.random.PRNGKey(0)
    kx, kp1, kp2 = jax.random.split(key, 3)

    fwd = jax.jit(residual_block_forward, static_argnums=2)

    # Tolerance accounts for bf16 MXU inputs (f32 accumulation) vs the pure-f32 reference.
    TOL = 5e-2

    # Case 1: downsample block (stride=2, cin != cout) -> exercises the fused 1x1-conv shortcut.
    N, CIN, COUT, H, W, STRIDE = 2, 4, 8, 16, 16, 2
    x = jax.random.normal(kx, (N, CIN, H, W), jnp.float32)
    params = init_params(kp1, CIN, COUT, STRIDE)
    out = jax.block_until_ready(fwd(x, params, STRIDE))
    ref = residual_block_reference(x, params, STRIDE)
    np.testing.assert_allclose(np.asarray(out), np.asarray(ref), rtol=TOL, atol=TOL)

    # Case 2: identity block (stride=1, cin == cout).
    x2 = jax.random.normal(kx, (N, COUT, H, W), jnp.float32)
    params_id = init_params(kp2, COUT, COUT, 1)
    out2 = jax.block_until_ready(fwd(x2, params_id, 1))
    ref2 = residual_block_reference(x2, params_id, 1)
    np.testing.assert_allclose(np.asarray(out2), np.asarray(ref2), rtol=TOL, atol=TOL)

    print("KERNEL_OK")
</pallas_src>

<mosaic_0001>
module attributes {stable_mosaic.version = 11 : i64} {
  func.func @_matmul_stats_fused_sc_kernel(%arg0: i32, %arg1: memref<128x36xbf16, #tpu.memory_space<vmem>>, %arg2: memref<36x128xbf16, #tpu.memory_space<vmem>>, %arg3: memref<128x4xbf16, #tpu.memory_space<vmem>>, %arg4: memref<4x128xbf16, #tpu.memory_space<vmem>>, %arg5: memref<128x128xf32, #tpu.memory_space<vmem>>, %arg6: memref<128x128xf32, #tpu.memory_space<vmem>>, %arg7: memref<1x2x128xf32, #tpu.memory_space<vmem>>, %arg8: memref<1x2x128xf32, #tpu.memory_space<vmem>>) attributes {dimension_semantics = [#tpu.dimension_semantics<parallel>], iteration_bounds = array<i64: 1>, scalar_prefetch = 0 : i64, scratch_operands = 0 : i64, tpu.core_type = #tpu.core_type<tc>, window_params = [{transform_indices = @transform_0, window_bounds = array<i64: 128, 36>}, {pipeline_mode = #tpu.pipeline_mode<synchronous>, transform_indices = @transform_1, window_bounds = array<i64: 36, 128>}, {transform_indices = @transform_2, window_bounds = array<i64: 128, 4>}, {pipeline_mode = #tpu.pipeline_mode<synchronous>, transform_indices = @transform_3, window_bounds = array<i64: 4, 128>}, {transform_indices = @transform_4, window_bounds = array<i64: 128, 128>}, {transform_indices = @transform_5, window_bounds = array<i64: 128, 128>}, {transform_indices = @transform_6, window_bounds = array<i64: 1, 2, 128>}, {transform_indices = @transform_7, window_bounds = array<i64: 1, 2, 128>}]} {
    %c0 = arith.constant 0 : index
    %c0_0 = arith.constant 0 : index
    %0 = vector.load %arg1[%c0, %c0_0] : memref<128x36xbf16, #tpu.memory_space<vmem>>, vector<128x36xbf16>
    %c0_1 = arith.constant 0 : index
    %c0_2 = arith.constant 0 : index
    %1 = vector.load %arg2[%c0_1, %c0_2] : memref<36x128xbf16, #tpu.memory_space<vmem>>, vector<36x128xbf16>
    %cst = arith.constant dense<0.000000e+00> : vector<128x128xf32>
    %2 = tpu.matmul %0, %1, %cst {dimension_numbers = #tpu.dot_dimension_numbers<[1], [0], [0], [1], [0, 0, 1, 1], [], []>} : vector<128x36xbf16>, vector<36x128xbf16>, vector<128x128xf32> -> vector<128x128xf32>
    %c0_3 = arith.constant 0 : index
    %c0_4 = arith.constant 0 : index
    %3 = vector.load %arg5[%c0_3, %c0_4] : memref<128x128xf32, #tpu.memory_space<vmem>>, vector<128x128xf32>
    tpu.vector_store %arg5[%c0_3, %c0_4], %2 {strides = array<i32>} : memref<128x128xf32, #tpu.memory_space<vmem>>, vector<128x128xf32>,
    %cst_5 = arith.constant dense<0.000000e+00> : vector<128xf32>
    %4 = vector.multi_reduction <add>, %2, %cst_5 [0] : vector<128x128xf32> to vector<128xf32>
    %5 = vector.shape_cast %4 : vector<128xf32> to vector<1x128xf32>
    %6 = arith.mulf %2, %2 : vector<128x128xf32>
    %cst_6 = arith.constant dense<0.000000e+00> : vector<128xf32>
    %7 = vector.multi_reduction <add>, %6, %cst_6 [0] : vector<128x128xf32> to vector<128xf32>
    %8 = vector.shape_cast %7 : vector<128xf32> to vector<1x128xf32>
    %9 = tpu.concatenate %5, %8 in 0 : vector<1x128xf32>, vector<1x128xf32> -> vector<2x128xf32>
    %10 = vector.shape_cast %9 : vector<2x128xf32> to vector<1x2x128xf32>
    %c0_7 = arith.constant 0 : index
    %c0_8 = arith.constant 0 : index
    %c0_9 = arith.constant 0 : index
    %11 = vector.load %arg7[%c0_7, %c0_8, %c0_9] : memref<1x2x128xf32, #tpu.memory_space<vmem>>, vector<1x2x128xf32>
    tpu.vector_store %arg7[%c0_7, %c0_8, %c0_9], %10 {strides = array<i32>} : memref<1x2x128xf32, #tpu.memory_space<vmem>>, vector<1x2x128xf32>,
    %c0_10 = arith.constant 0 : index
    %c0_11 = arith.constant 0 : index
    %12 = vector.load %arg3[%c0_10, %c0_11] : memref<128x4xbf16, #tpu.memory_space<vmem>>, vector<128x4xbf16>
    %c0_12 = arith.constant 0 : index
    %c0_13 = arith.constant 0 : index
    %13 = vector.load %arg4[%c0_12, %c0_13] : memref<4x128xbf16, #tpu.memory_space<vmem>>, vector<4x128xbf16>
    %cst_14 = arith.constant dense<0.000000e+00> : vector<128x128xf32>
    %14 = tpu.matmul %12, %13, %cst_14 {dimension_numbers = #tpu.dot_dimension_numbers<[1], [0], [0], [1], [0, 0, 1, 1], [], []>} : vector<128x4xbf16>, vector<4x128xbf16>, vector<128x128xf32> -> vector<128x128xf32>
    %c0_15 = arith.constant 0 : index
    %c0_16 = arith.constant 0 : index
    %15 = vector.load %arg6[%c0_15, %c0_16] : memref<128x128xf32, #tpu.memory_space<vmem>>, vector<128x128xf32>
    tpu.vector_store %arg6[%c0_15, %c0_16], %14 {strides = array<i32>} : memref<128x128xf32, #tpu.memory_space<vmem>>, vector<128x128xf32>,
    %cst_17 = arith.constant dense<0.000000e+00> : vector<128xf32>
    %16 = vector.multi_reduction <add>, %14, %cst_17 [0] : vector<128x128xf32> to vector<128xf32>
    %17 = vector.shape_cast %16 : vector<128xf32> to vector<1x128xf32>
    %18 = arith.mulf %14, %14 : vector<128x128xf32>
    %cst_18 = arith.constant dense<0.000000e+00> : vector<128xf32>
    %19 = vector.multi_reduction <add>, %18, %cst_18 [0] : vector<128x128xf32> to vector<128xf32>
    %20 = vector.shape_cast %19 : vector<128xf32> to vector<1x128xf32>
    %21 = tpu.concatenate %17, %20 in 0 : vector<1x128xf32>, vector<1x128xf32> -> vector<2x128xf32>
    %22 = vector.shape_cast %21 : vector<2x128xf32> to vector<1x2x128xf32>
    %c0_19 = arith.constant 0 : index
    %c0_20 = arith.constant 0 : index
    %c0_21 = arith.constant 0 : index
    %23 = vector.load %arg8[%c0_19, %c0_20, %c0_21] : memref<1x2x128xf32, #tpu.memory_space<vmem>>, vector<1x2x128xf32>
    tpu.vector_store %arg8[%c0_19, %c0_20, %c0_21], %22 {strides = array<i32>} : memref<1x2x128xf32, #tpu.memory_space<vmem>>, vector<1x2x128xf32>,
    return
  }
  func.func @transform_0(%arg0: i32) -> (i32, i32) {
    %c0_i32 = arith.constant 0 : i32
    %c0_i32_0 = arith.constant 0 : i32
    return %arg0, %c0_i32 : i32, i32
  }
  func.func @transform_1(%arg0: i32) -> (i32, i32) {
    %c0_i32 = arith.constant 0 : i32
    %c0_i32_0 = arith.constant 0 : i32
    %c0_i32_1 = arith.constant 0 : i32
    return %c0_i32, %c0_i32_0 : i32, i32
  }
  func.func @transform_2(%arg0: i32) -> (i32, i32) {
    %c0_i32 = arith.constant 0 : i32
    %c0_i32_0 = arith.constant 0 : i32
    return %arg0, %c0_i32 : i32, i32
  }
  func.func @transform_3(%arg0: i32) -> (i32, i32) {
    %c0_i32 = arith.constant 0 : i32
    %c0_i32_0 = arith.constant 0 : i32
    %c0_i32_1 = arith.constant 0 : i32
    return %c0_i32, %c0_i32_0 : i32, i32
  }
  func.func @transform_4(%arg0: i32) -> (i32, i32) {
    %c0_i32 = arith.constant 0 : i32
    %c0_i32_0 = arith.constant 0 : i32
    return %arg0, %c0_i32 : i32, i32
  }
  func.func @transform_5(%arg0: i32) -> (i32, i32) {
    %c0_i32 = arith.constant 0 : i32
    %c0_i32_0 = arith.constant 0 : i32
    return %arg0, %c0_i32 : i32, i32
  }
  func.func @transform_6(%arg0: i32) -> (i32, i32, i32) {
    %c0_i32 = arith.constant 0 : i32
    %c0_i32_0 = arith.constant 0 : i32
    %c0_i32_1 = arith.constant 0 : i32
    return %arg0, %c0_i32, %c0_i32_0 : i32, i32, i32
  }
  func.func @transform_7(%arg0: i32) -> (i32, i32, i32) {
    %c0_i32 = arith.constant 0 : i32
    %c0_i32_0 = arith.constant 0 : i32
    %c0_i32_1 = arith.constant 0 : i32
    return %arg0, %c0_i32, %c0_i32_0 : i32, i32, i32
  }
}

module attributes {stable_mosaic.version = 11 : i64} {
  func.func @_bn_act_kernel(%arg0: i32, %arg1: memref<128x128xf32, #tpu.memory_space<vmem>>, %arg2: memref<2x128xf32, #tpu.memory_space<vmem>>, %arg3: memref<1x128xf32, #tpu.memory_space<vmem>>, %arg4: memref<1x128xf32, #tpu.memory_space<vmem>>, %arg5: memref<128x128xbf16, #tpu.memory_space<vmem>>) attributes {dimension_semantics = [#tpu.dimension_semantics<parallel>], iteration_bounds = array<i64: 1>, scalar_prefetch = 0 : i64, scratch_operands = 0 : i64, tpu.core_type = #tpu.core_type<tc>, window_params = [{transform_indices = @transform_0, window_bounds = array<i64: 128, 128>}, {pipeline_mode = #tpu.pipeline_mode<synchronous>, transform_indices = @transform_1, window_bounds = array<i64: 2, 128>}, {pipeline_mode = #tpu.pipeline_mode<synchronous>, transform_indices = @transform_2, window_bounds = array<i64: 1, 128>}, {pipeline_mode = #tpu.pipeline_mode<synchronous>, transform_indices = @transform_3, window_bounds = array<i64: 1, 128>}, {transform_indices = @transform_4, window_bounds = array<i64: 128, 128>}]} {
    %c0 = arith.constant 0 : index
    %c0_0 = arith.constant 0 : index
    %0 = vector.load %arg2[%c0, %c0_0] : memref<2x128xf32, #tpu.memory_space<vmem>>, vector<2x128xf32>
    %c0_1 = arith.constant 0 : index
    %c0_2 = arith.constant 0 : index
    %1 = vector.load %arg3[%c0_1, %c0_2] : memref<1x128xf32, #tpu.memory_space<vmem>>, vector<1x128xf32>
    %c0_3 = arith.constant 0 : index
    %c0_4 = arith.constant 0 : index
    %2 = vector.load %arg4[%c0_3, %c0_4] : memref<1x128xf32, #tpu.memory_space<vmem>>, vector<1x128xf32>
    %3 = vector.extract_strided_slice %0 {offsets = [0, 0], sizes = [1, 128], strides = [1, 1]} : vector<2x128xf32> to vector<1x128xf32>
    %cst = arith.constant 7.812500e-03 : f32
    %4 = vector.broadcast %cst : f32 to vector<1x128xf32>
    %5 = arith.mulf %3, %4 : vector<1x128xf32>
    %6 = vector.extract_strided_slice %0 {offsets = [1, 0], sizes = [1, 128], strides = [1, 1]} : vector<2x128xf32> to vector<1x128xf32>
    %cst_5 = arith.constant 7.812500e-03 : f32
    %7 = vector.broadcast %cst_5 : f32 to vector<1x128xf32>
    %8 = arith.mulf %6, %7 : vector<1x128xf32>
    %9 = arith.mulf %5, %5 : vector<1x128xf32>
    %10 = arith.subf %8, %9 : vector<1x128xf32>
    %cst_6 = arith.constant 9.99999974E-6 : f32
    %11 = vector.broadcast %cst_6 : f32 to vector<1x128xf32>
    %12 = arith.addf %10, %11 : vector<1x128xf32>
    %13 = math.rsqrt %12 : vector<1x128xf32>
    %14 = arith.mulf %13, %1 : vector<1x128xf32>
    %15 = arith.mulf %5, %14 : vector<1x128xf32>
    %16 = arith.subf %2, %15 : vector<1x128xf32>
    %c0_7 = arith.constant 0 : index
    %c0_8 = arith.constant 0 : index
    %17 = vector.load %arg1[%c0_7, %c0_8] : memref<128x128xf32, #tpu.memory_space<vmem>>, vector<128x128xf32>
    %18 = vector.broadcast %14 : vector<1x128xf32> to vector<128x128xf32>
    %19 = arith.mulf %17, %18 : vector<128x128xf32>
    %20 = vector.broadcast %16 : vector<1x128xf32> to vector<128x128xf32>
    %21 = arith.addf %19, %20 : vector<128x128xf32>
    %cst_9 = arith.constant 0.000000e+00 : f32
    %22 = vector.broadcast %cst_9 : f32 to vector<128x128xf32>
    %23 = arith.maximumf %21, %22 : vector<128x128xf32>
    %24 = arith.truncf %23 : vector<128x128xf32> to vector<128x128xbf16>
    %c0_10 = arith.constant 0 : index
    %c0_11 = arith.constant 0 : index
    %25 = vector.load %arg5[%c0_10, %c0_11] : memref<128x128xbf16, #tpu.memory_space<vmem>>, vector<128x128xbf16>
    tpu.vector_store %arg5[%c0_10, %c0_11], %24 {strides = array<i32>} : memref<128x128xbf16, #tpu.memory_space<vmem>>, vector<128x128xbf16>,
    return
  }
  func.func @transform_0(%arg0: i32) -> (i32, i32) {
    %c0_i32 = arith.constant 0 : i32
    %c0_i32_0 = arith.constant 0 : i32
    return %arg0, %c0_i32 : i32, i32
  }
  func.func @transform_1(%arg0: i32) -> (i32, i32) {
    %c0_i32 = arith.constant 0 : i32
    %c0_i32_0 = arith.constant 0 : i32
    %c0_i32_1 = arith.constant 0 : i32
    return %c0_i32, %c0_i32_0 : i32, i32
  }
  func.func @transform_2(%arg0: i32) -> (i32, i32) {
    %c0_i32 = arith.constant 0 : i32
    %c0_i32_0 = arith.constant 0 : i32
    %c0_i32_1 = arith.constant 0 : i32
    return %c0_i32, %c0_i32_0 : i32, i32
  }
  func.func @transform_3(%arg0: i32) -> (i32, i32) {
    %c0_i32 = arith.constant 0 : i32
    %c0_i32_0 = arith.constant 0 : i32
    %c0_i32_1 = arith.constant 0 : i32
    return %c0_i32, %c0_i32_0 : i32, i32
  }
  func.func @transform_4(%arg0: i32) -> (i32, i32) {
    %c0_i32 = arith.constant 0 : i32
    %c0_i32_0 = arith.constant 0 : i32
    return %arg0, %c0_i32 : i32, i32
  }
}

module attributes {stable_mosaic.version = 11 : i64} {
  func.func @_bn_bn_add_relu_kernel(%arg0: i32, %arg1: memref<128x128xf32, #tpu.memory_space<vmem>>, %arg2: memref<2x128xf32, #tpu.memory_space<vmem>>, %arg3: memref<1x128xf32, #tpu.memory_space<vmem>>, %arg4: memref<1x128xf32, #tpu.memory_space<vmem>>, %arg5: memref<128x128xf32, #tpu.memory_space<vmem>>, %arg6: memref<2x128xf32, #tpu.memory_space<vmem>>, %arg7: memref<1x128xf32, #tpu.memory_space<vmem>>, %arg8: memref<1x128xf32, #tpu.memory_space<vmem>>, %arg9: memref<128x128xf32, #tpu.memory_space<vmem>>) attributes {dimension_semantics = [#tpu.dimension_semantics<parallel>], iteration_bounds = array<i64: 1>, scalar_prefetch = 0 : i64, scratch_operands = 0 : i64, tpu.core_type = #tpu.core_type<tc>, window_params = [{transform_indices = @transform_0, window_bounds = array<i64: 128, 128>}, {pipeline_mode = #tpu.pipeline_mode<synchronous>, transform_indices = @transform_1, window_bounds = array<i64: 2, 128>}, {pipeline_mode = #tpu.pipeline_mode<synchronous>, transform_indices = @transform_2, window_bounds = array<i64: 1, 128>}, {pipeline_mode = #tpu.pipeline_mode<synchronous>, transform_indices = @transform_3, window_bounds = array<i64: 1, 128>}, {transform_indices = @transform_4, window_bounds = array<i64: 128, 128>}, {pipeline_mode = #tpu.pipeline_mode<synchronous>, transform_indices = @transform_5, window_bounds = array<i64: 2, 128>}, {pipeline_mode = #tpu.pipeline_mode<synchronous>, transform_indices = @transform_6, window_bounds = array<i64: 1, 128>}, {pipeline_mode = #tpu.pipeline_mode<synchronous>, transform_indices = @transform_7, window_bounds = array<i64: 1, 128>}, {transform_indices = @transform_8, window_bounds = array<i64: 128, 128>}]} {
    %c0 = arith.constant 0 : index
    %c0_0 = arith.constant 0 : index
    %0 = vector.load %arg2[%c0, %c0_0] : memref<2x128xf32, #tpu.memory_space<vmem>>, vector<2x128xf32>
    %c0_1 = arith.constant 0 : index
    %c0_2 = arith.constant 0 : index
    %1 = vector.load %arg3[%c0_1, %c0_2] : memref<1x128xf32, #tpu.memory_space<vmem>>, vector<1x128xf32>
    %c0_3 = arith.constant 0 : index
    %c0_4 = arith.constant 0 : index
    %2 = vector.load %arg4[%c0_3, %c0_4] : memref<1x128xf32, #tpu.memory_space<vmem>>, vector<1x128xf32>
    %3 = vector.extract_strided_slice %0 {offsets = [0, 0], sizes = [1, 128], strides = [1, 1]} : vector<2x128xf32> to vector<1x128xf32>
    %cst = arith.constant 7.812500e-03 : f32
    %4 = vector.broadcast %cst : f32 to vector<1x128xf32>
    %5 = arith.mulf %3, %4 : vector<1x128xf32>
    %6 = vector.extract_strided_slice %0 {offsets = [1, 0], sizes = [1, 128], strides = [1, 1]} : vector<2x128xf32> to vector<1x128xf32>
    %cst_5 = arith.constant 7.812500e-03 : f32
    %7 = vector.broadcast %cst_5 : f32 to vector<1x128xf32>
    %8 = arith.mulf %6, %7 : vector<1x128xf32>
    %9 = arith.mulf %5, %5 : vector<1x128xf32>
    %10 = arith.subf %8, %9 : vector<1x128xf32>
    %cst_6 = arith.constant 9.99999974E-6 : f32
    %11 = vector.broadcast %cst_6 : f32 to vector<1x128xf32>
    %12 = arith.addf %10, %11 : vector<1x128xf32>
    %13 = math.rsqrt %12 : vector<1x128xf32>
    %14 = arith.mulf %13, %1 : vector<1x128xf32>
    %15 = arith.mulf %5, %14 : vector<1x128xf32>
    %16 = arith.subf %2, %15 : vector<1x128xf32>
    %c0_7 = arith.constant 0 : index
    %c0_8 = arith.constant 0 : index
    %17 = vector.load %arg6[%c0_7, %c0_8] : memref<2x128xf32, #tpu.memory_space<vmem>>, vector<2x128xf32>
    %c0_9 = arith.constant 0 : index
    %c0_10 = arith.constant 0 : index
    %18 = vector.load %arg7[%c0_9, %c0_10] : memref<1x128xf32, #tpu.memory_space<vmem>>, vector<1x128xf32>
    %c0_11 = arith.constant 0 : index
    %c0_12 = arith.constant 0 : index
    %19 = vector.load %arg8[%c0_11, %c0_12] : memref<1x128xf32, #tpu.memory_space<vmem>>, vector<1x128xf32>
    %20 = vector.extract_strided_slice %17 {offsets = [0, 0], sizes = [1, 128], strides = [1, 1]} : vector<2x128xf32> to vector<1x128xf32>
    %cst_13 = arith.constant 7.812500e-03 : f32
    %21 = vector.broadcast %cst_13 : f32 to vector<1x128xf32>
    %22 = arith.mulf %20, %21 : vector<1x128xf32>
    %23 = vector.extract_strided_slice %17 {offsets = [1, 0], sizes = [1, 128], strides = [1, 1]} : vector<2x128xf32> to vector<1x128xf32>
    %cst_14 = arith.constant 7.812500e-03 : f32
    %24 = vector.broadcast %cst_14 : f32 to vector<1x128xf32>
    %25 = arith.mulf %23, %24 : vector<1x128xf32>
    %26 = arith.mulf %22, %22 : vector<1x128xf32>
    %27 = arith.subf %25, %26 : vector<1x128xf32>
    %cst_15 = arith.constant 9.99999974E-6 : f32
    %28 = vector.broadcast %cst_15 : f32 to vector<1x128xf32>
    %29 = arith.addf %27, %28 : vector<1x128xf32>
    %30 = math.rsqrt %29 : vector<1x128xf32>
    %31 = arith.mulf %30, %18 : vector<1x128xf32>
    %32 = arith.mulf %22, %31 : vector<1x128xf32>
    %33 = arith.subf %19, %32 : vector<1x128xf32>
    %c0_16 = arith.constant 0 : index
    %c0_17 = arith.constant 0 : index
    %34 = vector.load %arg1[%c0_16, %c0_17] : memref<128x128xf32, #tpu.memory_space<vmem>>, vector<128x128xf32>
    %35 = vector.broadcast %14 : vector<1x128xf32> to vector<128x128xf32>
    %36 = arith.mulf %34, %35 : vector<128x128xf32>
    %37 = vector.broadcast %16 : vector<1x128xf32> to vector<128x128xf32>
    %38 = arith.addf %36, %37 : vector<128x128xf32>
    %c0_18 = arith.constant 0 : index
    %c0_19 = arith.constant 0 : index
    %39 = vector.load %arg5[%c0_18, %c0_19] : memref<128x128xf32, #tpu.memory_space<vmem>>, vector<128x128xf32>
    %40 = vector.broadcast %31 : vector<1x128xf32> to vector<128x128xf32>
    %41 = arith.mulf %39, %40 : vector<128x128xf32>
    %42 = arith.addf %38, %41 : vector<128x128xf32>
    %43 = vector.broadcast %33 : vector<1x128xf32> to vector<128x128xf32>
    %44 = arith.addf %42, %43 : vector<128x128xf32>
    %cst_20 = arith.constant 0.000000e+00 : f32
    %45 = vector.broadcast %cst_20 : f32 to vector<128x128xf32>
    %46 = arith.maximumf %44, %45 : vector<128x128xf32>
    %c0_21 = arith.constant 0 : index
    %c0_22 = arith.constant 0 : index
    %47 = vector.load %arg9[%c0_21, %c0_22] : memref<128x128xf32, #tpu.memory_space<vmem>>, vector<128x128xf32>
    tpu.vector_store %arg9[%c0_21, %c0_22], %46 {strides = array<i32>} : memref<128x128xf32, #tpu.memory_space<vmem>>, vector<128x128xf32>,
    return
  }
  func.func @transform_0(%arg0: i32) -> (i32, i32) {
    %c0_i32 = arith.constant 0 : i32
    %c0_i32_0 = arith.constant 0 : i32
    return %arg0, %c0_i32 : i32, i32
  }
  func.func @transform_1(%arg0: i32) -> (i32, i32) {
    %c0_i32 = arith.constant 0 : i32
    %c0_i32_0 = arith.constant 0 : i32
    %c0_i32_1 = arith.constant 0 : i32
    return %c0_i32, %c0_i32_0 : i32, i32
  }
  func.func @transform_2(%arg0: i32) -> (i32, i32) {
    %c0_i32 = arith.constant 0 : i32
    %c0_i32_0 = arith.constant 0 : i32
    %c0_i32_1 = arith.constant 0 : i32
    return %c0_i32, %c0_i32_0 : i32, i32
  }
  func.func @transform_3(%arg0: i32) -> (i32, i32) {
    %c0_i32 = arith.constant 0 : i32
    %c0_i32_0 = arith.constant 0 : i32
    %c0_i32_1 = arith.constant 0 : i32
    return %c0_i32, %c0_i32_0 : i32, i32
  }
  func.func @transform_4(%arg0: i32) -> (i32, i32) {
    %c0_i32 = arith.constant 0 : i32
    %c0_i32_0 = arith.constant 0 : i32
    return %arg0, %c0_i32 : i32, i32
  }
  func.func @transform_5(%arg0: i32) -> (i32, i32) {
    %c0_i32 = arith.constant 0 : i32
    %c0_i32_0 = arith.constant 0 : i32
    %c0_i32_1 = arith.constant 0 : i32
    return %c0_i32, %c0_i32_0 : i32, i32
  }
  func.func @transform_6(%arg0: i32) -> (i32, i32) {
    %c0_i32 = arith.constant 0 : i32
    %c0_i32_0 = arith.constant 0 : i32
    %c0_i32_1 = arith.constant 0 : i32
    return %c0_i32, %c0_i32_0 : i32, i32
  }
  func.func @transform_7(%arg0: i32) -> (i32, i32) {
    %c0_i32 = arith.constant 0 : i32
    %c0_i32_0 = arith.constant 0 : i32
    %c0_i32_1 = arith.constant 0 : i32
    return %c0_i32, %c0_i32_0 : i32, i32
  }
  func.func @transform_8(%arg0: i32) -> (i32, i32) {
    %c0_i32 = arith.constant 0 : i32
    %c0_i32_0 = arith.constant 0 : i32
    return %arg0, %c0_i32 : i32, i32
  }
}

module attributes {stable_mosaic.version = 11 : i64} {
  func.func @_matmul_stats_kernel(%arg0: i32, %arg1: memref<128x72xbf16, #tpu.memory_space<vmem>>, %arg2: memref<72x128xbf16, #tpu.memory_space<vmem>>, %arg3: memref<128x128xf32, #tpu.memory_space<vmem>>, %arg4: memref<1x2x128xf32, #tpu.memory_space<vmem>>) attributes {dimension_semantics = [#tpu.dimension_semantics<parallel>], iteration_bounds = array<i64: 1>, scalar_prefetch = 0 : i64, scratch_operands = 0 : i64, tpu.core_type = #tpu.core_type<tc>, window_params = [{transform_indices = @transform_0, window_bounds = array<i64: 128, 72>}, {pipeline_mode = #tpu.pipeline_mode<synchronous>, transform_indices = @transform_1, window_bounds = array<i64: 72, 128>}, {transform_indices = @transform_2, window_bounds = array<i64: 128, 128>}, {transform_indices = @transform_3, window_bounds = array<i64: 1, 2, 128>}]} {
    %c0 = arith.constant 0 : index
    %c0_0 = arith.constant 0 : index
    %0 = vector.load %arg1[%c0, %c0_0] : memref<128x72xbf16, #tpu.memory_space<vmem>>, vector<128x72xbf16>
    %c0_1 = arith.constant 0 : index
    %c0_2 = arith.constant 0 : index
    %1 = vector.load %arg2[%c0_1, %c0_2] : memref<72x128xbf16, #tpu.memory_space<vmem>>, vector<72x128xbf16>
    %cst = arith.constant dense<0.000000e+00> : vector<128x128xf32>
    %2 = tpu.matmul %0, %1, %cst {dimension_numbers = #tpu.dot_dimension_numbers<[1], [0], [0], [1], [0, 0, 1, 1], [], []>} : vector<128x72xbf16>, vector<72x128xbf16>, vector<128x128xf32> -> vector<128x128xf32>
    %c0_3 = arith.constant 0 : index
    %c0_4 = arith.constant 0 : index
    %3 = vector.load %arg3[%c0_3, %c0_4] : memref<128x128xf32, #tpu.memory_space<vmem>>, vector<128x128xf32>
    tpu.vector_store %arg3[%c0_3, %c0_4], %2 {strides = array<i32>} : memref<128x128xf32, #tpu.memory_space<vmem>>, vector<128x128xf32>,
    %cst_5 = arith.constant dense<0.000000e+00> : vector<128xf32>
    %4 = vector.multi_reduction <add>, %2, %cst_5 [0] : vector<128x128xf32> to vector<128xf32>
    %5 = vector.shape_cast %4 : vector<128xf32> to vector<1x128xf32>
    %6 = arith.mulf %2, %2 : vector<128x128xf32>
    %cst_6 = arith.constant dense<0.000000e+00> : vector<128xf32>
    %7 = vector.multi_reduction <add>, %6, %cst_6 [0] : vector<128x128xf32> to vector<128xf32>
    %8 = vector.shape_cast %7 : vector<128xf32> to vector<1x128xf32>
    %9 = tpu.concatenate %5, %8 in 0 : vector<1x128xf32>, vector<1x128xf32> -> vector<2x128xf32>
    %10 = vector.shape_cast %9 : vector<2x128xf32> to vector<1x2x128xf32>
    %c0_7 = arith.constant 0 : index
    %c0_8 = arith.constant 0 : index
    %c0_9 = arith.constant 0 : index
    %11 = vector.load %arg4[%c0_7, %c0_8, %c0_9] : memref<1x2x128xf32, #tpu.memory_space<vmem>>, vector<1x2x128xf32>
    tpu.vector_store %arg4[%c0_7, %c0_8, %c0_9], %10 {strides = array<i32>} : memref<1x2x128xf32, #tpu.memory_space<vmem>>, vector<1x2x128xf32>,
    return
  }
  func.func @transform_0(%arg0: i32) -> (i32, i32) {
    %c0_i32 = arith.constant 0 : i32
    %c0_i32_0 = arith.constant 0 : i32
    return %arg0, %c0_i32 : i32, i32
  }
  func.func @transform_1(%arg0: i32) -> (i32, i32) {
    %c0_i32 = arith.constant 0 : i32
    %c0_i32_0 = arith.constant 0 : i32
    %c0_i32_1 = arith.constant 0 : i32
    return %c0_i32, %c0_i32_0 : i32, i32
  }
  func.func @transform_2(%arg0: i32) -> (i32, i32) {
    %c0_i32 = arith.constant 0 : i32
    %c0_i32_0 = arith.constant 0 : i32
    return %arg0, %c0_i32 : i32, i32
  }
  func.func @transform_3(%arg0: i32) -> (i32, i32, i32) {
    %c0_i32 = arith.constant 0 : i32
    %c0_i32_0 = arith.constant 0 : i32
    %c0_i32_1 = arith.constant 0 : i32
    return %arg0, %c0_i32, %c0_i32_0 : i32, i32, i32
  }
}

</mosaic_0001>

<bundles_post_ra>
// kernel: residual_block_forward.5
= control target key start
LH: loop header
LB: loop body
LE: loop exit
PB: predicated region body
PF: predicated region fallthrough
CT: control target
= control target key end

     0   :  { %v56_v6 = vlaneseq  ;;  %s386_s1 = inlined_call_operand.vmem [shape: f32[2,128], index: 1, kind: input, shape index: {}]   ;;  %s387_s2 = inlined_call_operand.vmem [shape: f32[1,128], index: 2, kind: input, shape index: {}]   ;;  %s388_s0 = inlined_call_operand.vmem [shape: f32[128,128], index: 0, kind: input, shape index: {}]   ;;  %s389_s3 = inlined_call_operand.vmem [shape: f32[1,128], index: 3, kind: input, shape index: {}]   ;;  %s390_s4 = inlined_call_operand.vmem [shape: bf16[128,128], index: 4, kind: output, shape index: {}]  }
   0x1   :  { %v17_v0 = vld [vmem:[%s386_s1] sm:$0x3]  ;;  %v41_v15 = vld [vmem:[%s388_s0 + $0x8] sm:$0xff]  ;;  %v42_v17 = vld [vmem:[%s388_s0 + $0x10] sm:$0xff] }
   0x2   :  { %v20_v1 = vmul.f32 0.0078125, %v17_v0  ;;  %v57_v7 = vshrl.u32 %v56_v6, 7  ;;  %v198_v8 = vld [vmem:[%s387_s2] ss:$0 sm:$0xff]  ;;  %v43_v18 = vld [vmem:[%s388_s0 + $0x18] sm:$0xff]  ;;  %v45_v20 = vld [vmem:[%s388_s0 + $0x28] sm:$0xff] }
   0x3   :  { %v19_v12 = vld [vmem:[%s389_s3] sm:$0x1]  ;;  %v46_v21 = vld [vmem:[%s388_s0 + $0x30] sm:$0xff]  ;;  %v47_v24 = vld [vmem:[%s388_s0 + $0x38] sm:$0xff] }
   0x4   :  { %v21_v2 = vmul.f32 %v20_v1, %v20_v1  ;;  %v58_v9 = vsub.s32 1, %v57_v7  ;;  %v40_v13 = vld [vmem:[%s388_s0] sm:$0xff]  ;;  %v79_v23 = vsub.s32 0, %v57_v7  ;;  %v49_v26 = vld [vmem:[%s388_s0 + $0x48] sm:$0xff]  ;;  %v50_v29 = vld [vmem:[%s388_s0 + $0x50] sm:$0xff] }
   0x5   :  { %v44_v19 = vld [vmem:[%s388_s0 + $0x20] sm:$0xff]  ;;  %v51_v30 = vld [vmem:[%s388_s0 + $0x58] sm:$0xff]  ;;  %v53_v36 = vld [vmem:[%s388_s0 + $0x68] sm:$0xff] }
   0x6   :  { %v23_v3 = vrot.slane %v21_v2, 7  ;;  %v48_v25 = vld [vmem:[%s388_s0 + $0x40] sm:$0xff]  ;;  %v54_v37 = vld [vmem:[%s388_s0 + $0x70] sm:$0xff]  ;;  %v55_v38 = vld [vmem:[%s388_s0 + $0x78] sm:$0xff] }
   0x7   :  { %v52_v31 = vld [vmem:[%s388_s0 + $0x60] sm:$0xff] }
   0x8   :  { %v25_v4 = vsub.f32 %v20_v1, %v23_v3 }
   0xa   :  { %v26_v5 = vadd.f32 1e-05, %v25_v4 }
   0xc   :  { %278 = vrsqrt.f32 %v26_v5 }
  0x16   :  { %v279_v10 = vpop.eup %278 }
  0x17   :  { %v34_v11 = vmul.f32 %v279_v10, %v198_v8 }
  0x19   :  { %v36_v14 = vrot.slane %v34_v11, 1  ;;  %v59_v16 = vrot.slane %v34_v11, %v58_v9 }
  0x1b   :  { %v38_v22 = vmul.f32 %v36_v14, %v20_v1  ;;  %v60_v27 = vmul.f32 %v59_v16, %v40_v13  ;;  %v61_v28 = vmul.f32 %v59_v16, %v41_v15  ;;  %v62_v33 = vmul.f32 %v59_v16, %v42_v17 }
  0x1c   :  { %v63_v34 = vmul.f32 %v59_v16, %v43_v18  ;;  %v64_v35 = vmul.f32 %v59_v16, %v44_v19  ;;  %v65_v39 = vmul.f32 %v59_v16, %v45_v20  ;;  %v66_v40 = vmul.f32 %v59_v16, %v46_v21 }
  0x1d   :  { %v39_v32 = vsub.f32 %v19_v12, %v38_v22  ;;  %v67_v41 = vmul.f32 %v59_v16, %v47_v24  ;;  %v68_v42 = vmul.f32 %v59_v16, %v48_v25  ;;  %v69_v44 = vmul.f32 %v59_v16, %v49_v26 }
  0x1e   :  { %v70_v45 = vmul.f32 %v59_v16, %v50_v29  ;;  %v71_v46 = vmul.f32 %v59_v16, %v51_v30  ;;  %v72_v47 = vmul.f32 %v59_v16, %v52_v31  ;;  %v73_v48 = vmul.f32 %v59_v16, %v53_v36 }
  0x1f   :  { %v80_v43 = vrot.slane %v39_v32, %v79_v23  ;;  %v74_v49 = vmul.f32 %v59_v16, %v54_v37  ;;  %v75_v50 = vmul.f32 %v59_v16, %v55_v38 }
  0x21   :  { %v82_v51 = vadd.f32 %v80_v43, %v60_v27  ;;  %v83_v52 = vadd.f32 %v80_v43, %v61_v28  ;;  %v84_v53 = vadd.f32 %v80_v43, %v62_v33  ;;  %v85_v54 = vadd.f32 %v80_v43, %v63_v34 }
  0x22   :  { %v86_v55 = vadd.f32 %v80_v43, %v64_v35  ;;  %v87_v56 = vadd.f32 %v80_v43, %v65_v39  ;;  %v88_v57 = vadd.f32 %v80_v43, %v66_v40  ;;  %v89_v58 = vadd.f32 %v80_v43, %v67_v41 }
  0x23   :  { %v98_v59 = vmax.f32 %v82_v51, 0.0  ;;  %v99_v60 = vmax.f32 %v83_v52, 0.0  ;;  %v100_v61 = vmax.f32 %v84_v53, 0.0  ;;  %v101_v62 = vmax.f32 %v85_v54, 0.0 }
  0x24   :  { %v102_v63 = vmax.f32 %v86_v55, 0.0  ;;  %v103_v0 = vmax.f32 %v87_v56, 0.0  ;;  %v104_v1 = vmax.f32 %v88_v57, 0.0  ;;  %v105_v2 = vmax.f32 %v89_v58, 0.0 }
  0x25   :  { %v234_v3 = vpack.c.bf16 %v99_v60, %v98_v59  ;;  %v239_v4 = vpack.c.bf16 %v101_v62, %v100_v61  ;;  %v90_v5 = vadd.f32 %v80_v43, %v68_v42  ;;  %v91_v6 = vadd.f32 %v80_v43, %v69_v44 }
  0x26   :  { %v244_v7 = vpack.c.bf16 %v103_v0, %v102_v63  ;;  %v249_v8 = vpack.c.bf16 %v105_v2, %v104_v1  ;;  %v92_v9 = vadd.f32 %v80_v43, %v70_v45  ;;  %v93_v10 = vadd.f32 %v80_v43, %v71_v46 }
  0x27   :  { %235 = vst [vmem:[%s390_s4] sm:$0xff] %v234_v3   ;;  %271 = vst [vmem:[%s390_s4 + $0x8] sm:$0xff] %v239_v4   ;;  %v106_v11 = vmax.f32 %v90_v5, 0.0  ;;  %v107_v12 = vmax.f32 %v91_v6, 0.0  ;;  %v94_v13 = vadd.f32 %v80_v43, %v72_v47  ;;  %v95_v14 = vadd.f32 %v80_v43, %v73_v48 }
  0x28   :  { %272 = vst [vmem:[%s390_s4 + $0x10] sm:$0xff] %v244_v7   ;;  %273 = vst [vmem:[%s390_s4 + $0x18] sm:$0xff] %v249_v8   ;;  %v108_v15 = vmax.f32 %v92_v9, 0.0  ;;  %v109_v16 = vmax.f32 %v93_v10, 0.0  ;;  %v96_v17 = vadd.f32 %v80_v43, %v74_v49  ;;  %v97_v18 = vadd.f32 %v80_v43, %v75_v50 }
  0x29   :  { %v254_v19 = vpack.c.bf16 %v107_v12, %v106_v11  ;;  %v110_v20 = vmax.f32 %v94_v13, 0.0  ;;  %v111_v21 = vmax.f32 %v95_v14, 0.0 }
  0x2a   :  { %v259_v22 = vpack.c.bf16 %v109_v16, %v108_v15  ;;  %v112_v23 = vmax.f32 %v96_v17, 0.0  ;;  %v113_v24 = vmax.f32 %v97_v18, 0.0 }
  0x2b   :  { %274 = vst [vmem:[%s390_s4 + $0x20] sm:$0xff] %v254_v19   ;;  %v264_v25 = vpack.c.bf16 %v111_v21, %v110_v20 }
  0x2c   :  { %275 = vst [vmem:[%s390_s4 + $0x28] sm:$0xff] %v259_v22   ;;  %v269_v26 = vpack.c.bf16 %v113_v24, %v112_v23 }
  0x2d   :  { %276 = vst [vmem:[%s390_s4 + $0x30] sm:$0xff] %v264_v25  }
  0x2e   :  { %277 = vst [vmem:[%s390_s4 + $0x38] sm:$0xff] %v269_v26  }

// kernel: residual_block_forward.4
= control target key start
LH: loop header
LB: loop body
LE: loop exit
PB: predicated region body
PF: predicated region fallthrough
CT: control target
= control target key end

     0   :  { %vm123_vm0 = vcmask 1041408   ;;  %vm358_vm1 = vcmask 31744   ;;  %vm98_vm2 = vcmask 293888   ;;  %vm298_vm3 = vcmask 1040384   ;;  %s915_s3 = inlined_call_operand.vmem [shape: bf16[4,128], index: 3, kind: input, shape index: {}]   ;;  %s916_s1 = inlined_call_operand.vmem [shape: bf16[36,128], index: 1, kind: input, shape index: {}]   ;;  %s917_s2 = inlined_call_operand.vmem [shape: bf16[128,4], index: 2, kind: input, shape index: {}]   ;;  %s918_s0 = inlined_call_operand.vmem [shape: bf16[128,36], index: 0, kind: input, shape index: {}]   ;;  %s919_s5 = inlined_call_operand.vmem [shape: f32[128,128], index: 5, kind: output, shape index: {1}]   ;;  %s920_s4 = inlined_call_operand.vmem [shape: f32[128,128], index: 4, kind: output, shape index: {0}]   ;;  %s921_s7 = inlined_call_operand.vmem [shape: f32[1,2,128], index: 7, kind: output, shape index: {3}]   ;;  %s922_s6 = inlined_call_operand.vmem [shape: f32[1,2,128], index: 6, kind: output, shape index: {2}]  }
   0x1   :  { %v317_v0 = vld [vmem:[%s915_s3] sm:$0x3]  ;;  %v674_v4 = vld [vmem:[%s917_s2 + $0x8] sm:$0xff]   ;;  %v676_v6 = vld [vmem:[%s916_s1 + $0x10] ss:$0 sps:$4 sm:$0x33]  }
   0x2   :  { %671 = vmatprep.subr.msk.bf16.mxu1 %vm123_vm0, %v317_v0  ;;  %v384_v1 = vsel %vm123_vm0, %v317_v0, 0  ;;  %v672_v2 = vld [vmem:[%s916_s1] sm:$0xff]   ;;  %v675_v5 = vld [vmem:[%s916_s1 + $0x8] sm:$0xff]   ;;  %v677_v7 = vld [vmem:[%s917_s2 + $0x10] sm:$0xff]   ;;  %v125_v9 = vsel %vm123_vm0, %v676_v6, 0 }
   0x3   :  { %653 = vmatpush3.bf16.msra.mxu1 %v384_v1  ;;  %v673_v3 = vld [vmem:[%s917_s2] sm:$0xff]   ;;  %630 = vmatprep.subr.bf16.mxu0 %v672_v2  ;;  %v678_v10 = vld [vmem:[%s917_s2 + $0x18] sm:$0xff]   ;;  %v680_v12 = vld [vmem:[%s918_s0 + $0x8] sm:$0xff]  }
   0x4   :  { %631 = vmatpush3.bf16.msra.mxu0 %v672_v2  ;;  %654 = vmatprep.mubr.msk.bf16.mxu1 %vm358_vm1, %v673_v3  ;;  %v679_v8 = vld [vmem:[%s918_s0] sm:$0xff]   ;;  %v683_v13 = vld [vmem:[%s918_s0 + $0x10] sm:$0xff]   ;;  %v682_v14 = vld [vmem:[%s917_s2 + $0x28] sm:$0xff]  }
   0x5   :  { %632 = vmatprep.subr.bf16.mxu0 %v675_v5  ;;  %636 = vmatprep.mubr.msk.bf16.mxu0 %vm98_vm2, %v679_v8  ;;  %v681_v11 = vld [vmem:[%s917_s2 + $0x20] sm:$0xff]   ;;  %v685_v15 = vld [vmem:[%s917_s2 + $0x30] sm:$0xff]   ;;  %v684_v16 = vld [vmem:[%s918_s0 + $0x18] sm:$0xff]  }
   0x6   :  { %655 = vmatmul.mubr.msk.bf16.vlgmr.msra.gmra.mrb[0].mxu1 %vm358_vm1, %v674_v4  ;;  %v687_v17 = vld [vmem:[%s918_s0 + $0x20] sm:$0xff]   ;;  %v686_v18 = vld [vmem:[%s917_s2 + $0x38] sm:$0xff]   ;;  %v688_v19 = vld [vmem:[%s918_s0 + $0x28] sm:$0xff]  }
   0x7   :  { %658 = vmatprep.mubr.msk.bf16.mxu1 %vm358_vm1, %v677_v7  ;;  %v689_v20 = vld [vmem:[%s918_s0 + $0x30] sm:$0xff]   ;;  %v690_v21 = vld [vmem:[%s918_s0 + $0x38] sm:$0xff]  }
   0x8   :  { %633 = vmatpush3.bf16.msra.mxu0 %v675_v5 }
   0x9   :  { %670 = vmatprep.subr.msk.bf16.mxu0 %vm123_vm0, %v676_v6 }
   0xc   :  { %635 = vmatpush3.bf16.msra.mxu0 %v125_v9 }
   0xe   :  { %659 = vmatmul.mubr.msk.bf16.gmra.mrb[4].mxu1 %vm358_vm1, %v678_v10 }
   0xf   :  { %662 = vmatprep.mubr.msk.bf16.mxu1 %vm358_vm1, %v681_v11  ;;  %637 = vmatmul.mubr.msk.bf16.vlgmr.msra.gmra.mrb[0].mxu0 %vm98_vm2, %v680_v12 }
  0x10   :  { %640 = vmatprep.mubr.msk.bf16.mxu0 %vm98_vm2, %v683_v13 }
  0x16   :  { %663 = vmatmul.mubr.msk.bf16.gmra.mrb[8].mxu1 %vm358_vm1, %v682_v14 }
  0x17   :  { %666 = vmatprep.mubr.msk.bf16.mxu1 %vm358_vm1, %v685_v15  ;;  %641 = vmatmul.mubr.msk.bf16.gmra.mrb[4].mxu0 %vm98_vm2, %v684_v16 }
  0x18   :  { %644 = vmatprep.mubr.msk.bf16.mxu0 %vm98_vm2, %v687_v17 }
  0x1e   :  { %667 = vmatmul.mubr.msk.bf16.gmra.mrb[12].mxu1 %vm358_vm1, %v686_v18 }
  0x1f   :  { %645 = vmatmul.mubr.msk.bf16.gmra.mrb[8].mxu0 %vm98_vm2, %v688_v19 }
  0x20   :  { %648 = vmatprep.mubr.msk.bf16.mxu0 %vm98_vm2, %v689_v20 }
  0x27   :  { %649 = vmatmul.mubr.msk.bf16.gmra.mrb[12].mxu0 %vm98_vm2, %v690_v21 }
  0xd9   :  { %v656_v22 = vpop.f32.mrb[0].mxu1 }
  0xda   :  { %485 = vst [vmem:[%s919_s5 + $0x10] sm:$0xff] %v656_v22  ;;  %v420_v23 = vpop.f32.mrb[1].mxu1  ;;  %v522_v27 = vmul.f32 %v656_v22, %v656_v22 }
  0xdb   :  { %483 = vst [vmem:[%s919_s5] sm:$0xff] %v420_v23  ;;  %v520_v24 = vmul.f32 %v420_v23, %v420_v23  ;;  %v657_v25 = vpop.f32.mrb[2].mxu1 }
  0xdc   :  { %486 = vst [vmem:[%s919_s5 + $0x18] sm:$0xff] %v657_v25  ;;  %v423_v26 = vpop.f32.mrb[3].mxu1  ;;  %v523_v30 = vmul.f32 %v657_v25, %v657_v25 }
  0xdd   :  { %484 = vst [vmem:[%s919_s5 + $0x8] sm:$0xff] %v423_v26  ;;  %v499_v28 = vadd.f32 %v423_v26, %v420_v23  ;;  %v521_v29 = vmul.f32 %v423_v26, %v423_v26 }
  0xdf   :  { %v500_v31 = vadd.f32 %v656_v22, %v499_v28  ;;  %v536_v32 = vadd.f32 %v521_v29, %v520_v24 }
  0xe1   :  { %v537_v33 = vadd.f32 %v536_v32, %v522_v27  ;;  %v660_v34 = vpop.f32.mrb[4].mxu1  ;;  %v501_v35 = vadd.f32 %v657_v25, %v500_v31 }
  0xe2   :  { %489 = vst [vmem:[%s919_s5 + $0x30] sm:$0xff] %v660_v34  ;;  %v436_v36 = vpop.f32.mrb[5].mxu1  ;;  %v638_v40 = vpop.f32.mrb[0].mxu0  ;;  %v526_v44 = vmul.f32 %v660_v34, %v660_v34 }
  0xe3   :  { %487 = vst [vmem:[%s919_s5 + $0x20] sm:$0xff] %v436_v36  ;;  %v502_v37 = vadd.f32 %v501_v35, %v436_v36  ;;  %v524_v38 = vmul.f32 %v436_v36, %v436_v36  ;;  %v538_v39 = vadd.f32 %v537_v33, %v523_v30  ;;  %v661_v41 = vpop.f32.mrb[6].mxu1  ;;  %226 = vst [vmem:[%s920_s4 + $0x10] sm:$0xff] %v638_v40  ;;  %v161_v42 = vpop.f32.mrb[1].mxu0 }
  0xe4   :  { %490 = vst [vmem:[%s919_s5 + $0x38] sm:$0xff] %v661_v41  ;;  %v439_v43 = vpop.f32.mrb[7].mxu1  ;;  %224 = vst [vmem:[%s920_s4] sm:$0xff] %v161_v42  ;;  %v639_v48 = vpop.f32.mrb[2].mxu0  ;;  %v527_v49 = vmul.f32 %v661_v41, %v661_v41  ;;  %v261_v50 = vmul.f32 %v161_v42, %v161_v42  ;;  %v263_v56 = vmul.f32 %v638_v40, %v638_v40 }
  0xe5   :  { %v539_v45 = vadd.f32 %v538_v39, %v524_v38  ;;  %488 = vst [vmem:[%s919_s5 + $0x28] sm:$0xff] %v439_v43  ;;  %v503_v46 = vadd.f32 %v502_v37, %v439_v43  ;;  %v525_v47 = vmul.f32 %v439_v43, %v439_v43  ;;  %227 = vst [vmem:[%s920_s4 + $0x18] sm:$0xff] %v639_v48  ;;  %v164_v51 = vpop.f32.mrb[3].mxu0 }
  0xe6   :  { %225 = vst [vmem:[%s920_s4 + $0x8] sm:$0xff] %v164_v51  ;;  %v240_v54 = vadd.f32 %v164_v51, %v161_v42  ;;  %v262_v55 = vmul.f32 %v164_v51, %v164_v51  ;;  %v264_v62 = vmul.f32 %v639_v48, %v639_v48 }
  0xe7   :  { %v504_v52 = vadd.f32 %v660_v34, %v503_v46  ;;  %v540_v53 = vadd.f32 %v539_v45, %v525_v47 }
  0xe8   :  { %v241_v58 = vadd.f32 %v638_v40, %v240_v54  ;;  %v277_v59 = vadd.f32 %v262_v55, %v261_v50 }
  0xe9   :  { %v541_v57 = vadd.f32 %v540_v53, %v526_v44  ;;  %v664_v60 = vpop.f32.mrb[8].mxu1  ;;  %v505_v61 = vadd.f32 %v661_v41, %v504_v52 }
  0xea   :  { %493 = vst [vmem:[%s919_s5 + $0x50] sm:$0xff] %v664_v60  ;;  %v452_v63 = vpop.f32.mrb[9].mxu1  ;;  %v278_v0 = vadd.f32 %v277_v59, %v263_v56  ;;  %v642_v4 = vpop.f32.mrb[4].mxu0  ;;  %v242_v7 = vadd.f32 %v639_v48, %v241_v58  ;;  %v530_v14 = vmul.f32 %v664_v60, %v664_v60 }
  0xeb   :  { %491 = vst [vmem:[%s919_s5 + $0x40] sm:$0xff] %v452_v63  ;;  %v506_v1 = vadd.f32 %v505_v61, %v452_v63  ;;  %v528_v2 = vmul.f32 %v452_v63, %v452_v63  ;;  %v542_v3 = vadd.f32 %v541_v57, %v527_v49  ;;  %v665_v5 = vpop.f32.mrb[10].mxu1  ;;  %230 = vst [vmem:[%s920_s4 + $0x30] sm:$0xff] %v642_v4  ;;  %v177_v6 = vpop.f32.mrb[5].mxu0 }
  0xec   :  { %494 = vst [vmem:[%s919_s5 + $0x58] sm:$0xff] %v665_v5  ;;  %v455_v8 = vpop.f32.mrb[11].mxu1  ;;  %228 = vst [vmem:[%s920_s4 + $0x20] sm:$0xff] %v177_v6  ;;  %v265_v10 = vmul.f32 %v177_v6, %v177_v6  ;;  %v279_v11 = vadd.f32 %v278_v0, %v264_v62  ;;  %v643_v13 = vpop.f32.mrb[6].mxu0  ;;  %v243_v15 = vadd.f32 %v242_v7, %v177_v6 }
  0xed   :  { %v543_v9 = vadd.f32 %v542_v3, %v528_v2  ;;  %492 = vst [vmem:[%s919_s5 + $0x48] sm:$0xff] %v455_v8  ;;  %v507_v12 = vadd.f32 %v506_v1, %v455_v8  ;;  %v529_v16 = vmul.f32 %v455_v8, %v455_v8  ;;  %231 = vst [vmem:[%s920_s4 + $0x38] sm:$0xff] %v643_v13  ;;  %v180_v17 = vpop.f32.mrb[7].mxu0 }
  0xee   :  { %v280_v18 = vadd.f32 %v279_v11, %v265_v10  ;;  %229 = vst [vmem:[%s920_s4 + $0x28] sm:$0xff] %v180_v17  ;;  %v266_v20 = vmul.f32 %v180_v17, %v180_v17  ;;  %v531_v21 = vmul.f32 %v665_v5, %v665_v5  ;;  %v244_v23 = vadd.f32 %v243_v15, %v180_v17 }
  0xef   :  { %v508_v19 = vadd.f32 %v664_v60, %v507_v12  ;;  %v544_v22 = vadd.f32 %v543_v9, %v529_v16  ;;  %v267_v24 = vmul.f32 %v642_v4, %v642_v4  ;;  %v268_v31 = vmul.f32 %v643_v13, %v643_v13 }
  0xf0   :  { %v281_v25 = vadd.f32 %v280_v18, %v266_v20  ;;  %v245_v29 = vadd.f32 %v642_v4, %v244_v23 }
  0xf1   :  { %v668_v26 = vpop.f32.mrb[12].mxu1  ;;  %v509_v27 = vadd.f32 %v665_v5, %v508_v19  ;;  %v545_v28 = vadd.f32 %v544_v22, %v530_v14 }
  0xf2   :  { %497 = vst [vmem:[%s919_s5 + $0x70] sm:$0xff] %v668_v26  ;;  %v468_v30 = vpop.f32.mrb[13].mxu1  ;;  %v282_v32 = vadd.f32 %v281_v25, %v267_v24  ;;  %v646_v35 = vpop.f32.mrb[8].mxu0  ;;  %v246_v39 = vadd.f32 %v643_v13, %v245_v29  ;;  %v534_v46 = vmul.f32 %v668_v26, %v668_v26 }
  0xf3   :  { %495 = vst [vmem:[%s919_s5 + $0x60] sm:$0xff] %v468_v30  ;;  %v510_v33 = vadd.f32 %v509_v27, %v468_v30  ;;  %v532_v34 = vmul.f32 %v468_v30, %v468_v30  ;;  %v669_v36 = vpop.f32.mrb[14].mxu1  ;;  %v546_v37 = vadd.f32 %v545_v28, %v531_v21  ;;  %234 = vst [vmem:[%s920_s4 + $0x50] sm:$0xff] %v646_v35  ;;  %v193_v38 = vpop.f32.mrb[9].mxu0 }
  0xf4   :  { %498 = vst [vmem:[%s919_s5 + $0x78] sm:$0xff] %v669_v36  ;;  %v471_v40 = vpop.f32.mrb[15].mxu1  ;;  %232 = vst [vmem:[%s920_s4 + $0x40] sm:$0xff] %v193_v38  ;;  %v269_v41 = vmul.f32 %v193_v38, %v193_v38  ;;  %v283_v42 = vadd.f32 %v282_v32, %v268_v31  ;;  %v647_v45 = vpop.f32.mrb[10].mxu0  ;;  %v247_v48 = vadd.f32 %v246_v39, %v193_v38 }
  0xf5   :  { %496 = vst [vmem:[%s919_s5 + $0x68] sm:$0xff] %v471_v40  ;;  %v511_v43 = vadd.f32 %v510_v33, %v471_v40  ;;  %v533_v44 = vmul.f32 %v471_v40, %v471_v40  ;;  %v547_v47 = vadd.f32 %v546_v37, %v532_v34  ;;  %235 = vst [vmem:[%s920_s4 + $0x58] sm:$0xff] %v647_v45  ;;  %v196_v49 = vpop.f32.mrb[11].mxu0 }
  0xf6   :  { %v284_v50 = vadd.f32 %v283_v42, %v269_v41  ;;  %233 = vst [vmem:[%s920_s4 + $0x48] sm:$0xff] %v196_v49  ;;  %v270_v52 = vmul.f32 %v196_v49, %v196_v49  ;;  %v535_v53 = vmul.f32 %v669_v36, %v669_v36  ;;  %v248_v55 = vadd.f32 %v247_v48, %v196_v49 }
  0xf7   :  { %v512_v51 = vadd.f32 %v668_v26, %v511_v43  ;;  %v548_v54 = vadd.f32 %v547_v47, %v533_v44  ;;  %v271_v56 = vmul.f32 %v646_v35, %v646_v35  ;;  %v272_v62 = vmul.f32 %v647_v45, %v647_v45 }
  0xf8   :  { %v285_v58 = vadd.f32 %v284_v50, %v270_v52  ;;  %v249_v60 = vadd.f32 %v646_v35, %v248_v55 }
  0xf9   :  { %v513_v57 = vadd.f32 %v669_v36, %v512_v51  ;;  %v549_v59 = vadd.f32 %v548_v54, %v534_v46 }
  0xfa   :  { %v286_v63 = vadd.f32 %v285_v58, %v271_v56  ;;  %v650_v0 = vpop.f32.mrb[12].mxu0  ;;  %v250_v3 = vadd.f32 %v647_v45, %v249_v60 }
  0xfb   :  { %v514_v61 = vrot.slane %v513_v57, 4  ;;  %v550_v1 = vadd.f32 %v549_v59, %v535_v53  ;;  %238 = vst [vmem:[%s920_s4 + $0x70] sm:$0xff] %v650_v0  ;;  %v209_v2 = vpop.f32.mrb[13].mxu0  ;;  %v275_v17 = vmul.f32 %v650_v0, %v650_v0 }
  0xfc   :  { %236 = vst [vmem:[%s920_s4 + $0x60] sm:$0xff] %v209_v2  ;;  %v273_v5 = vmul.f32 %v209_v2, %v209_v2  ;;  %v287_v6 = vadd.f32 %v286_v63, %v272_v62  ;;  %v651_v7 = vpop.f32.mrb[14].mxu0  ;;  %v251_v9 = vadd.f32 %v250_v3, %v209_v2 }
  0xfd   :  { %v515_v4 = vadd.f32 %v514_v61, %v513_v57  ;;  %v551_v8 = vrot.slane %v550_v1, 4  ;;  %239 = vst [vmem:[%s920_s4 + $0x78] sm:$0xff] %v651_v7  ;;  %v212_v10 = vpop.f32.mrb[15].mxu0  ;;  %v276_v21 = vmul.f32 %v651_v7, %v651_v7 }
  0xfe   :  { %v288_v12 = vadd.f32 %v287_v6, %v273_v5  ;;  %237 = vst [vmem:[%s920_s4 + $0x68] sm:$0xff] %v212_v10  ;;  %v274_v13 = vmul.f32 %v212_v10, %v212_v10  ;;  %v252_v15 = vadd.f32 %v251_v9, %v212_v10 }
  0xff   :  { %v516_v11 = vrot.slane %v515_v4, 2  ;;  %v552_v14 = vadd.f32 %v551_v8, %v550_v1 }
 0x100   :  { %v289_v18 = vadd.f32 %v288_v12, %v274_v13  ;;  %v253_v20 = vadd.f32 %v650_v0, %v252_v15 }
 0x101   :  { %v517_v16 = vadd.f32 %v516_v11, %v515_v4  ;;  %v553_v19 = vrot.slane %v552_v14, 2 }
 0x102   :  { %v290_v22 = vadd.f32 %v289_v18, %v275_v17  ;;  %v254_v25 = vadd.f32 %v651_v7, %v253_v20 }
 0x103   :  { %v518_v23 = vrot.slane %v517_v16, 1  ;;  %v554_v24 = vadd.f32 %v553_v19, %v552_v14 }
 0x104   :  { %v291_v26 = vadd.f32 %v290_v22, %v276_v21  ;;  %v255_v28 = vrot.slane %v254_v25, 4 }
 0x105   :  { %v555_v27 = vrot.slane %v554_v24, 1  ;;  %v519_v30 = vadd.f32 %v518_v23, %v517_v16 }
 0x106   :  { %v292_v29 = vrot.slane %v291_v26, 4  ;;  %v256_v32 = vadd.f32 %v255_v28, %v254_v25 }
 0x107   :  { %v556_v31 = vadd.f32 %v555_v27, %v554_v24 }
 0x108   :  { %v293_v33 = vadd.f32 %v292_v29, %v291_v26  ;;  %v257_v35 = vrot.slane %v256_v32, 2 }
 0x109   :  { %v557_v34 = vsel %vm298_vm3, %v519_v30, %v556_v31 }
 0x10a   :  { %558 = vst [vmem:[%s921_s7] sm:$0x3] %v557_v34  ;;  %v294_v36 = vrot.slane %v293_v33, 2  ;;  %v258_v37 = vadd.f32 %v257_v35, %v256_v32 }
 0x10c   :  { %v295_v38 = vadd.f32 %v294_v36, %v293_v33  ;;  %v259_v39 = vrot.slane %v258_v37, 1 }
 0x10e   :  { %v296_v40 = vrot.slane %v295_v38, 1  ;;  %v260_v41 = vadd.f32 %v259_v39, %v258_v37 }
 0x110   :  { %v297_v42 = vadd.f32 %v296_v40, %v295_v38 }
 0x112   :  { %v299_v43 = vsel %vm298_vm3, %v260_v41, %v297_v42 }
 0x113   :  { %300 = vst [vmem:[%s922_s6] sm:$0x3] %v299_v43 }

// kernel: residual_block_forward.7
= control target key start
LH: loop header
LB: loop body
LE: loop exit
PB: predicated region body
PF: predicated region fallthrough
CT: control target
= control target key end

     0   :  { %v91_v12 = vlaneseq  ;;  %s528_s1 = inlined_call_operand.vmem [shape: f32[2,128], index: 1, kind: input, shape index: {}]   ;;  %s529_s5 = inlined_call_operand.vmem [shape: f32[2,128], index: 5, kind: input, shape index: {}]   ;;  %s530_s2 = inlined_call_operand.vmem [shape: f32[1,128], index: 2, kind: input, shape index: {}]   ;;  %s531_s6 = inlined_call_operand.vmem [shape: f32[1,128], index: 6, kind: input, shape index: {}]   ;;  %s532_s0 = inlined_call_operand.vmem [shape: f32[128,128], index: 0, kind: input, shape index: {}]   ;;  %s533_s3 = inlined_call_operand.vmem [shape: f32[1,128], index: 3, kind: input, shape index: {}]   ;;  %s534_s4 = inlined_call_operand.vmem [shape: f32[128,128], index: 4, kind: input, shape index: {}]   ;;  %s535_s7 = inlined_call_operand.vmem [shape: f32[1,128], index: 7, kind: input, shape index: {}]   ;;  %s536_s8 = inlined_call_operand.vmem [shape: f32[128,128], index: 8, kind: output, shape index: {}]  }
   0x1   :  { %v29_v0 = vld [vmem:[%s528_s1] sm:$0x3]  ;;  %v76_v23 = vld [vmem:[%s532_s0 + $0x8] sm:$0xff]  ;;  %v77_v24 = vld [vmem:[%s532_s0 + $0x10] sm:$0xff] }
   0x2   :  { %v32_v1 = vmul.f32 0.0078125, %v29_v0  ;;  %v52_v2 = vld [vmem:[%s529_s5] sm:$0x3]  ;;  %v92_v13 = vshrl.u32 %v91_v12, 7  ;;  %v134_v29 = vld [vmem:[%s534_s4 + $0x8] sm:$0xff]  ;;  %v135_v30 = vld [vmem:[%s534_s4 + $0x10] sm:$0xff] }
   0x3   :  { %v55_v3 = vmul.f32 0.0078125, %v52_v2  ;;  %v243_v14 = vld [vmem:[%s530_s2] ss:$0 sm:$0xff]  ;;  %v78_v34 = vld [vmem:[%s532_s0 + $0x18] sm:$0xff]  ;;  %v80_v42 = vld [vmem:[%s532_s0 + $0x28] sm:$0xff] }
   0x4   :  { %v33_v4 = vmul.f32 %v32_v1, %v32_v1  ;;  %v244_v15 = vld [vmem:[%s531_s6] ss:$0 sm:$0xff]  ;;  %v93_v16 = vsub.s32 1, %v92_v13  ;;  %v114_v32 = vsub.s32 0, %v92_v13  ;;  %v136_v35 = vld [vmem:[%s534_s4 + $0x18] sm:$0xff]  ;;  %v138_v43 = vld [vmem:[%s534_s4 + $0x28] sm:$0xff] }
   0x5   :  { %v56_v5 = vmul.f32 %v55_v3, %v55_v3  ;;  %v31_v20 = vld [vmem:[%s533_s3] sm:$0x1]  ;;  %v81_v48 = vld [vmem:[%s532_s0 + $0x30] sm:$0xff]  ;;  %v82_v50 = vld [vmem:[%s532_s0 + $0x38] sm:$0xff] }
   0x6   :  { %v35_v6 = vrot.slane %v33_v4, 7  ;;  %v75_v22 = vld [vmem:[%s532_s0] sm:$0xff]  ;;  %v139_v49 = vld [vmem:[%s534_s4 + $0x30] sm:$0xff]  ;;  %v140_v55 = vld [vmem:[%s534_s4 + $0x38] sm:$0xff] }
   0x7   :  { %v58_v7 = vrot.slane %v56_v5, 7  ;;  %v54_v26 = vld [vmem:[%s535_s7] sm:$0x1] }
   0x8   :  { %v37_v8 = vsub.f32 %v32_v1, %v35_v6  ;;  %v133_v28 = vld [vmem:[%s534_s4] sm:$0xff] }
   0x9   :  { %v60_v9 = vsub.f32 %v55_v3, %v58_v7  ;;  %v79_v36 = vld [vmem:[%s532_s0 + $0x20] sm:$0xff] }
   0xa   :  { %v38_v10 = vadd.f32 1e-05, %v37_v8  ;;  %v137_v41 = vld [vmem:[%s534_s4 + $0x20] sm:$0xff] }
   0xb   :  { %v61_v11 = vadd.f32 1e-05, %v60_v9  ;;  %v83_v56 = vld [vmem:[%s532_s0 + $0x40] sm:$0xff] }
   0xc   :  { %245 = vrsqrt.f32 %v38_v10  ;;  %v141_v57 = vld [vmem:[%s534_s4 + $0x40] sm:$0xff] }
   0xd   :  { %247 = vrsqrt.f32 %v61_v11 }
  0x16   :  { %v246_v17 = vpop.eup %245 }
  0x17   :  { %v248_v18 = vpop.eup %247  ;;  %v46_v19 = vmul.f32 %v246_v17, %v243_v14 }
  0x18   :  { %v69_v21 = vmul.f32 %v248_v18, %v244_v15 }
  0x19   :  { %v48_v25 = vrot.slane %v46_v19, 1  ;;  %v321_v27 = vrot.slane %v46_v19, %v93_v16 }
  0x1a   :  { %v71_v31 = vrot.slane %v69_v21, 1  ;;  %v332_v33 = vrot.slane %v69_v21, %v93_v16 }
  0x1b   :  { %v50_v37 = vmul.f32 %v48_v25, %v32_v1  ;;  %v95_v38 = vmul.f32 %v321_v27, %v75_v22  ;;  %v96_v39 = vmul.f32 %v321_v27, %v76_v23  ;;  %v97_v40 = vmul.f32 %v321_v27, %v77_v24 }
  0x1c   :  { %v73_v44 = vmul.f32 %v71_v31, %v55_v3  ;;  %v153_v45 = vmul.f32 %v332_v33, %v133_v28  ;;  %v154_v46 = vmul.f32 %v332_v33, %v134_v29  ;;  %v155_v47 = vmul.f32 %v332_v33, %v135_v30  ;;  %v142_v28 = vld [vmem:[%s534_s4 + $0x48] sm:$0xff] }
  0x1d   :  { %v51_v51 = vsub.f32 %v31_v20, %v50_v37  ;;  %v98_v52 = vmul.f32 %v321_v27, %v78_v34  ;;  %v156_v53 = vmul.f32 %v332_v33, %v136_v35  ;;  %v99_v54 = vmul.f32 %v321_v27, %v79_v36  ;;  %v85_v34 = vld [vmem:[%s532_s0 + $0x50] sm:$0xff]  ;;  %v86_v36 = vld [vmem:[%s532_s0 + $0x58] sm:$0xff] }
  0x1e   :  { %v74_v58 = vsub.f32 %v54_v26, %v73_v44  ;;  %v157_v59 = vmul.f32 %v332_v33, %v137_v41  ;;  %v100_v60 = vmul.f32 %v321_v27, %v80_v42  ;;  %v158_v61 = vmul.f32 %v332_v33, %v138_v43  ;;  %v84_v26 = vld [vmem:[%s532_s0 + $0x48] sm:$0xff]  ;;  %v143_v35 = vld [vmem:[%s534_s4 + $0x50] sm:$0xff]  ;;  %v144_v41 = vld [vmem:[%s534_s4 + $0x58] sm:$0xff] }
  0x1f   :  { %v382_v62 = vrot.slane %v51_v51, %v114_v32  ;;  %v101_v63 = vmul.f32 %v321_v27, %v81_v48  ;;  %v159_v0 = vmul.f32 %v332_v33, %v139_v49  ;;  %v102_v1 = vmul.f32 %v321_v27, %v82_v50  ;;  %v87_v42 = vld [vmem:[%s532_s0 + $0x60] sm:$0xff] }
  0x20   :  { %v387_v2 = vrot.slane %v74_v58, %v114_v32  ;;  %v160_v3 = vmul.f32 %v332_v33, %v140_v55  ;;  %v103_v4 = vmul.f32 %v321_v27, %v83_v56  ;;  %v161_v5 = vmul.f32 %v332_v33, %v141_v57  ;;  %v89_v58 = vld [vmem:[%s532_s0 + $0x70] sm:$0xff] }
  0x21   :  { %v117_v6 = vadd.f32 %v382_v62, %v95_v38  ;;  %v118_v7 = vadd.f32 %v382_v62, %v96_v39  ;;  %v119_v8 = vadd.f32 %v382_v62, %v97_v40  ;;  %v120_v9 = vadd.f32 %v382_v62, %v98_v52  ;;  %v88_v52 = vld [vmem:[%s532_s0 + $0x68] sm:$0xff] }
  0x22   :  { %v121_v10 = vadd.f32 %v382_v62, %v99_v54  ;;  %v122_v11 = vadd.f32 %v382_v62, %v100_v60  ;;  %v123_v12 = vadd.f32 %v382_v62, %v101_v63  ;;  %v124_v13 = vadd.f32 %v382_v62, %v102_v1 }
  0x23   :  { %v169_v14 = vadd.f32 %v153_v45, %v117_v6  ;;  %v170_v15 = vadd.f32 %v154_v46, %v118_v7  ;;  %v171_v16 = vadd.f32 %v155_v47, %v119_v8  ;;  %v172_v17 = vadd.f32 %v156_v53, %v120_v9  ;;  %v145_v47 = vld [vmem:[%s534_s4 + $0x60] sm:$0xff]  ;;  %v146_v53 = vld [vmem:[%s534_s4 + $0x68] sm:$0xff] }
  0x24   :  { %v173_v18 = vadd.f32 %v157_v59, %v121_v10  ;;  %v174_v19 = vadd.f32 %v158_v61, %v122_v11  ;;  %v175_v20 = vadd.f32 %v159_v0, %v123_v12  ;;  %v176_v21 = vadd.f32 %v160_v3, %v124_v13  ;;  %v147_v0 = vld [vmem:[%s534_s4 + $0x70] sm:$0xff]  ;;  %v90_v10 = vld [vmem:[%s532_s0 + $0x78] sm:$0xff] }
  0x25   :  { %v191_v22 = vadd.f32 %v387_v2, %v169_v14  ;;  %v192_v23 = vadd.f32 %v387_v2, %v170_v15  ;;  %v193_v24 = vadd.f32 %v387_v2, %v171_v16  ;;  %v194_v25 = vadd.f32 %v387_v2, %v172_v17  ;;  %v148_v15 = vld [vmem:[%s534_s4 + $0x78] sm:$0xff] }
  0x26   :  { %v195_v29 = vadd.f32 %v387_v2, %v173_v18  ;;  %v196_v30 = vadd.f32 %v387_v2, %v174_v19  ;;  %v197_v31 = vadd.f32 %v387_v2, %v175_v20  ;;  %v198_v32 = vadd.f32 %v387_v2, %v176_v21 }
  0x27   :  { %v207_v37 = vmax.f32 %v191_v22, 0.0  ;;  %v208_v38 = vmax.f32 %v192_v23, 0.0  ;;  %v209_v39 = vmax.f32 %v193_v24, 0.0  ;;  %v210_v40 = vmax.f32 %v194_v25, 0.0 }
  0x28   :  { %v211_v43 = vmax.f32 %v195_v29, 0.0  ;;  %v212_v44 = vmax.f32 %v196_v30, 0.0  ;;  %v213_v45 = vmax.f32 %v197_v31, 0.0  ;;  %v214_v46 = vmax.f32 %v198_v32, 0.0 }
  0x29   :  { %223 = vst [vmem:[%s536_s8] sm:$0xff] %v207_v37  ;;  %224 = vst [vmem:[%s536_s8 + $0x8] sm:$0xff] %v208_v38  ;;  %v125_v48 = vadd.f32 %v382_v62, %v103_v4  ;;  %v104_v49 = vmul.f32 %v321_v27, %v84_v26  ;;  %v162_v50 = vmul.f32 %v332_v33, %v142_v28 }
  0x2a   :  { %225 = vst [vmem:[%s536_s8 + $0x10] sm:$0xff] %v209_v39  ;;  %226 = vst [vmem:[%s536_s8 + $0x18] sm:$0xff] %v210_v40  ;;  %v105_v51 = vmul.f32 %v321_v27, %v85_v34  ;;  %v163_v54 = vmul.f32 %v332_v33, %v143_v35  ;;  %v106_v55 = vmul.f32 %v321_v27, %v86_v36 }
  0x2b   :  { %227 = vst [vmem:[%s536_s8 + $0x20] sm:$0xff] %v211_v43  ;;  %228 = vst [vmem:[%s536_s8 + $0x28] sm:$0xff] %v212_v44  ;;  %v164_v56 = vmul.f32 %v332_v33, %v144_v41  ;;  %v107_v57 = vmul.f32 %v321_v27, %v87_v42  ;;  %v177_v59 = vadd.f32 %v161_v5, %v125_v48 }
  0x2c   :  { %229 = vst [vmem:[%s536_s8 + $0x30] sm:$0xff] %v213_v45  ;;  %230 = vst [vmem:[%s536_s8 + $0x38] sm:$0xff] %v214_v46  ;;  %v126_v60 = vadd.f32 %v382_v62, %v104_v49  ;;  %v127_v61 = vadd.f32 %v382_v62, %v105_v51  ;;  %v165_v63 = vmul.f32 %v332_v33, %v145_v47 }
  0x2d   :  { %v128_v1 = vadd.f32 %v382_v62, %v106_v55  ;;  %v129_v3 = vadd.f32 %v382_v62, %v107_v57  ;;  %v108_v4 = vmul.f32 %v321_v27, %v88_v52  ;;  %v166_v6 = vmul.f32 %v332_v33, %v146_v53 }
  0x2e   :  { %v199_v5 = vadd.f32 %v387_v2, %v177_v59  ;;  %v178_v7 = vadd.f32 %v162_v50, %v126_v60  ;;  %v179_v8 = vadd.f32 %v163_v54, %v127_v61  ;;  %v109_v9 = vmul.f32 %v321_v27, %v89_v58 }
  0x2f   :  { %v180_v11 = vadd.f32 %v164_v56, %v128_v1  ;;  %v181_v12 = vadd.f32 %v165_v63, %v129_v3  ;;  %v130_v13 = vadd.f32 %v382_v62, %v108_v4  ;;  %v167_v14 = vmul.f32 %v332_v33, %v147_v0 }
  0x30   :  { %v215_v16 = vmax.f32 %v199_v5, 0.0  ;;  %v200_v17 = vadd.f32 %v387_v2, %v178_v7  ;;  %v201_v18 = vadd.f32 %v387_v2, %v179_v8  ;;  %v131_v19 = vadd.f32 %v382_v62, %v109_v9 }
  0x31   :  { %v202_v20 = vadd.f32 %v387_v2, %v180_v11  ;;  %v203_v21 = vadd.f32 %v387_v2, %v181_v12  ;;  %v182_v22 = vadd.f32 %v166_v6, %v130_v13  ;;  %v110_v23 = vmul.f32 %v321_v27, %v90_v10 }
  0x32   :  { %231 = vst [vmem:[%s536_s8 + $0x40] sm:$0xff] %v215_v16  ;;  %v216_v24 = vmax.f32 %v200_v17, 0.0  ;;  %v217_v25 = vmax.f32 %v201_v18, 0.0  ;;  %v183_v26 = vadd.f32 %v167_v14, %v131_v19  ;;  %v168_v28 = vmul.f32 %v332_v33, %v148_v15 }
  0x33   :  { %v218_v29 = vmax.f32 %v202_v20, 0.0  ;;  %v219_v30 = vmax.f32 %v203_v21, 0.0  ;;  %v204_v31 = vadd.f32 %v387_v2, %v182_v22  ;;  %v132_v32 = vadd.f32 %v382_v62, %v110_v23 }
  0x34   :  { %232 = vst [vmem:[%s536_s8 + $0x48] sm:$0xff] %v216_v24  ;;  %233 = vst [vmem:[%s536_s8 + $0x50] sm:$0xff] %v217_v25  ;;  %v205_v27 = vadd.f32 %v387_v2, %v183_v26 }
  0x35   :  { %234 = vst [vmem:[%s536_s8 + $0x58] sm:$0xff] %v218_v29  ;;  %235 = vst [vmem:[%s536_s8 + $0x60] sm:$0xff] %v219_v30  ;;  %v220_v33 = vmax.f32 %v204_v31, 0.0  ;;  %v184_v62 = vadd.f32 %v168_v28, %v132_v32 }
  0x36   :  { %v221_v34 = vmax.f32 %v205_v27, 0.0 }
  0x37   :  { %236 = vst [vmem:[%s536_s8 + $0x68] sm:$0xff] %v220_v33  ;;  %v206_v35 = vadd.f32 %v387_v2, %v184_v62 }
  0x38   :  { %237 = vst [vmem:[%s536_s8 + $0x70] sm:$0xff] %v221_v34 }
  0x39   :  { %v222_v36 = vmax.f32 %v206_v35, 0.0 }
  0x3b   :  { %238 = vst [vmem:[%s536_s8 + $0x78] sm:$0xff] %v222_v36 }

// kernel: residual_block_forward.6
= control target key start
LH: loop header
LB: loop body
LE: loop exit
PB: predicated region body
PF: predicated region fallthrough
CT: control target
= control target key end

     0   :  { %vm106_vm0 = vcmask 588800   ;;  %vm131_vm1 = vcmask 1043456   ;;  %vm306_vm2 = vcmask 1040384   ;;  %s520_s1 = inlined_call_operand.vmem [shape: bf16[72,128], index: 1, kind: input, shape index: {}]   ;;  %s521_s0 = inlined_call_operand.vmem [shape: bf16[128,72], index: 0, kind: input, shape index: {}]   ;;  %s522_s2 = inlined_call_operand.vmem [shape: f32[128,128], index: 2, kind: output, shape index: {0}]   ;;  %s523_s3 = inlined_call_operand.vmem [shape: f32[1,2,128], index: 3, kind: output, shape index: {1}]  }
   0x1   :  { %v389_v0 = vld [vmem:[%s520_s1] sm:$0xff]   ;;  %v390_v1 = vld [vmem:[%s520_s1 + $0x8] sm:$0xff]   ;;  %v391_v2 = vld [vmem:[%s520_s1 + $0x10] sm:$0xff]  }
   0x2   :  { %351 = vmatprep.subr.bf16.mxu0 %v389_v0  ;;  %377 = vmatprep.subr.bf16.mxu1 %v389_v0  ;;  %v394_v3 = vld [vmem:[%s521_s0] sm:$0xff]   ;;  %v392_v4 = vld [vmem:[%s520_s1 + $0x18] sm:$0xff]   ;;  %v395_v8 = vld [vmem:[%s521_s0 + $0x8] sm:$0xff]  }
   0x3   :  { %352 = vmatpush3.bf16.msra.mxu0 %v389_v0  ;;  %382 = vmatpush3.bf16.msra.mxu1 %v389_v0  ;;  %v398_v5 = vld [vmem:[%s521_s0 + $0x20] sm:$0xff]   ;;  %v399_v9 = vld [vmem:[%s521_s0 + $0x28] sm:$0xff]   ;;  %v396_v10 = vld [vmem:[%s521_s0 + $0x10] sm:$0xff]  }
   0x4   :  { %353 = vmatprep.subr.bf16.mxu0 %v390_v1  ;;  %378 = vmatprep.subr.bf16.mxu1 %v390_v1  ;;  %v393_v6 = vld [vmem:[%s520_s1 + $0x20] ss:$0 sps:$4 sm:$0xff]   ;;  %v400_v11 = vld [vmem:[%s521_s0 + $0x30] sm:$0xff]   ;;  %v397_v12 = vld [vmem:[%s521_s0 + $0x18] sm:$0xff]  }
   0x5   :  { %361 = vmatprep.mubr.msk.bf16.mxu0 %vm106_vm0, %v394_v3  ;;  %369 = vmatprep.mubr.msk.bf16.mxu1 %vm106_vm0, %v398_v5  ;;  %v133_v7 = vsel %vm131_vm1, %v393_v6, 0  ;;  %v401_v13 = vld [vmem:[%s521_s0 + $0x38] sm:$0xff]  }
   0x7   :  { %354 = vmatpush3.bf16.msra.mxu0 %v390_v1  ;;  %383 = vmatpush3.bf16.msra.mxu1 %v390_v1 }
   0x8   :  { %355 = vmatprep.subr.bf16.mxu0 %v391_v2  ;;  %379 = vmatprep.subr.bf16.mxu1 %v391_v2 }
   0xb   :  { %356 = vmatpush3.bf16.msra.mxu0 %v391_v2  ;;  %384 = vmatpush3.bf16.msra.mxu1 %v391_v2 }
   0xc   :  { %357 = vmatprep.subr.bf16.mxu0 %v392_v4  ;;  %380 = vmatprep.subr.bf16.mxu1 %v392_v4 }
   0xf   :  { %358 = vmatpush3.bf16.msra.mxu0 %v392_v4  ;;  %385 = vmatpush3.bf16.msra.mxu1 %v392_v4 }
  0x10   :  { %387 = vmatprep.subr.msk.bf16.mxu0 %vm131_vm1, %v393_v6  ;;  %388 = vmatprep.subr.msk.bf16.mxu1 %vm131_vm1, %v393_v6 }
  0x13   :  { %360 = vmatpush3.bf16.msra.mxu0 %v133_v7  ;;  %386 = vmatpush3.bf16.msra.mxu1 %v133_v7 }
  0x16   :  { %362 = vmatmul.mubr.msk.bf16.vlgmr.msra.gmra.mrb[0].mxu0 %vm106_vm0, %v395_v8  ;;  %370 = vmatmul.mubr.msk.bf16.vlgmr.msra.gmra.mrb[0].mxu1 %vm106_vm0, %v399_v9 }
  0x17   :  { %365 = vmatprep.mubr.msk.bf16.mxu0 %vm106_vm0, %v396_v10  ;;  %373 = vmatprep.mubr.msk.bf16.mxu1 %vm106_vm0, %v400_v11 }
  0x1e   :  { %366 = vmatmul.mubr.msk.bf16.gmra.mrb[4].mxu0 %vm106_vm0, %v397_v12  ;;  %374 = vmatmul.mubr.msk.bf16.gmra.mrb[4].mxu1 %vm106_vm0, %v401_v13 }
  0xe9   :  { %v363_v14 = vpop.f32.mrb[0].mxu0  ;;  %v371_v15 = vpop.f32.mrb[0].mxu1 }
  0xea   :  { %234 = vst [vmem:[%s522_s2 + $0x10] sm:$0xff] %v363_v14  ;;  %v169_v16 = vpop.f32.mrb[1].mxu0  ;;  %242 = vst [vmem:[%s522_s2 + $0x50] sm:$0xff] %v371_v15  ;;  %v201_v17 = vpop.f32.mrb[1].mxu1  ;;  %v271_v25 = vmul.f32 %v363_v14, %v363_v14  ;;  %v279_v57 = vmul.f32 %v371_v15, %v371_v15 }
  0xeb   :  { %232 = vst [vmem:[%s522_s2] sm:$0xff] %v169_v16  ;;  %v364_v18 = vpop.f32.mrb[2].mxu0  ;;  %240 = vst [vmem:[%s522_s2 + $0x40] sm:$0xff] %v201_v17  ;;  %v372_v19 = vpop.f32.mrb[2].mxu1  ;;  %v269_v22 = vmul.f32 %v169_v16, %v169_v16  ;;  %v277_v51 = vmul.f32 %v201_v17, %v201_v17 }
  0xec   :  { %235 = vst [vmem:[%s522_s2 + $0x18] sm:$0xff] %v364_v18  ;;  %v172_v20 = vpop.f32.mrb[3].mxu0  ;;  %243 = vst [vmem:[%s522_s2 + $0x58] sm:$0xff] %v372_v19  ;;  %v204_v21 = vpop.f32.mrb[3].mxu1  ;;  %v272_v28 = vmul.f32 %v364_v18, %v364_v18  ;;  %v280_v60 = vmul.f32 %v372_v19, %v372_v19 }
  0xed   :  { %233 = vst [vmem:[%s522_s2 + $0x8] sm:$0xff] %v172_v20  ;;  %v248_v23 = vadd.f32 %v172_v20, %v169_v16  ;;  %v270_v24 = vmul.f32 %v172_v20, %v172_v20  ;;  %241 = vst [vmem:[%s522_s2 + $0x48] sm:$0xff] %v204_v21  ;;  %v278_v56 = vmul.f32 %v204_v21, %v204_v21 }
  0xef   :  { %v249_v26 = vadd.f32 %v363_v14, %v248_v23  ;;  %v285_v27 = vadd.f32 %v270_v24, %v269_v22 }
  0xf1   :  { %v286_v29 = vadd.f32 %v285_v27, %v271_v25  ;;  %v367_v30 = vpop.f32.mrb[4].mxu0  ;;  %v250_v31 = vadd.f32 %v364_v18, %v249_v26  ;;  %v375_v32 = vpop.f32.mrb[4].mxu1 }
  0xf2   :  { %238 = vst [vmem:[%s522_s2 + $0x30] sm:$0xff] %v367_v30  ;;  %v185_v33 = vpop.f32.mrb[5].mxu0  ;;  %246 = vst [vmem:[%s522_s2 + $0x70] sm:$0xff] %v375_v32  ;;  %v217_v34 = vpop.f32.mrb[5].mxu1  ;;  %v275_v45 = vmul.f32 %v367_v30, %v367_v30  ;;  %v283_v5 = vmul.f32 %v375_v32, %v375_v32 }
  0xf3   :  { %236 = vst [vmem:[%s522_s2 + $0x20] sm:$0xff] %v185_v33  ;;  %v251_v35 = vadd.f32 %v250_v31, %v185_v33  ;;  %v273_v36 = vmul.f32 %v185_v33, %v185_v33  ;;  %v287_v37 = vadd.f32 %v286_v29, %v272_v28  ;;  %v368_v38 = vpop.f32.mrb[6].mxu0  ;;  %244 = vst [vmem:[%s522_s2 + $0x60] sm:$0xff] %v217_v34  ;;  %v376_v39 = vpop.f32.mrb[6].mxu1 }
  0xf4   :  { %239 = vst [vmem:[%s522_s2 + $0x38] sm:$0xff] %v368_v38  ;;  %v188_v40 = vpop.f32.mrb[7].mxu0  ;;  %247 = vst [vmem:[%s522_s2 + $0x78] sm:$0xff] %v376_v39  ;;  %v220_v41 = vpop.f32.mrb[7].mxu1  ;;  %v276_v48 = vmul.f32 %v368_v38, %v368_v38  ;;  %v281_v63 = vmul.f32 %v217_v34, %v217_v34  ;;  %v284_v8 = vmul.f32 %v376_v39, %v376_v39 }
  0xf5   :  { %v288_v42 = vadd.f32 %v287_v37, %v273_v36  ;;  %237 = vst [vmem:[%s522_s2 + $0x28] sm:$0xff] %v188_v40  ;;  %v252_v43 = vadd.f32 %v251_v35, %v188_v40  ;;  %v274_v44 = vmul.f32 %v188_v40, %v188_v40  ;;  %245 = vst [vmem:[%s522_s2 + $0x68] sm:$0xff] %v220_v41 }
  0xf6   :  { %v282_v4 = vmul.f32 %v220_v41, %v220_v41 }
  0xf7   :  { %v253_v46 = vadd.f32 %v367_v30, %v252_v43  ;;  %v289_v47 = vadd.f32 %v288_v42, %v274_v44 }
  0xf9   :  { %v290_v49 = vadd.f32 %v289_v47, %v275_v45  ;;  %v254_v50 = vadd.f32 %v368_v38, %v253_v46 }
  0xfb   :  { %v255_v52 = vadd.f32 %v254_v50, %v201_v17  ;;  %v291_v53 = vadd.f32 %v290_v49, %v276_v48 }
  0xfd   :  { %v292_v54 = vadd.f32 %v291_v53, %v277_v51  ;;  %v256_v55 = vadd.f32 %v255_v52, %v204_v21 }
  0xff   :  { %v257_v58 = vadd.f32 %v371_v15, %v256_v55  ;;  %v293_v59 = vadd.f32 %v292_v54, %v278_v56 }
 0x101   :  { %v294_v61 = vadd.f32 %v293_v59, %v279_v57  ;;  %v258_v62 = vadd.f32 %v372_v19, %v257_v58 }
 0x103   :  { %v259_v0 = vadd.f32 %v258_v62, %v217_v34  ;;  %v295_v1 = vadd.f32 %v294_v61, %v280_v60 }
 0x105   :  { %v296_v2 = vadd.f32 %v295_v1, %v281_v63  ;;  %v260_v3 = vadd.f32 %v259_v0, %v220_v41 }
 0x107   :  { %v261_v6 = vadd.f32 %v375_v32, %v260_v3  ;;  %v297_v7 = vadd.f32 %v296_v2, %v282_v4 }
 0x109   :  { %v262_v9 = vadd.f32 %v376_v39, %v261_v6  ;;  %v298_v10 = vadd.f32 %v297_v7, %v283_v5 }
 0x10b   :  { %v263_v11 = vrot.slane %v262_v9, 4  ;;  %v299_v12 = vadd.f32 %v298_v10, %v284_v8 }
 0x10d   :  { %v264_v13 = vadd.f32 %v263_v11, %v262_v9  ;;  %v300_v14 = vrot.slane %v299_v12, 4 }
 0x10f   :  { %v265_v15 = vrot.slane %v264_v13, 2  ;;  %v301_v16 = vadd.f32 %v300_v14, %v299_v12 }
 0x111   :  { %v266_v17 = vadd.f32 %v265_v15, %v264_v13  ;;  %v302_v18 = vrot.slane %v301_v16, 2 }
 0x113   :  { %v267_v19 = vrot.slane %v266_v17, 1  ;;  %v303_v20 = vadd.f32 %v302_v18, %v301_v16 }
 0x115   :  { %v304_v21 = vrot.slane %v303_v20, 1  ;;  %v268_v22 = vadd.f32 %v267_v19, %v266_v17 }
 0x117   :  { %v305_v23 = vadd.f32 %v304_v21, %v303_v20 }
 0x119   :  { %v307_v24 = vsel %vm306_vm2, %v268_v22, %v305_v23 }
 0x11a   :  { %308 = vst [vmem:[%s523_s3] sm:$0x3] %v307_v24 }

</bundles_post_ra>
